<compile_context>
chip_gen: v7x
topology: tpu7x:2x2x1
jax: 0.10.0
libtpu: 0.0.40
codegen_flags: <defaults>
</compile_context>

<pallas_src>
import math

import jax
import jax.numpy as jnp
from jax import lax
from jax.experimental import pallas as pl
from jax.experimental.pallas import tpu as pltpu


# ----------------------------------------------------------------------------- glue
def linear_interpolate_ncl(x, target_length):
    """F.interpolate(x, size=T, mode='linear', align_corners=False) for (B, C, L)."""
    B, C, L = x.shape
    T = target_length
    if L == T:
        return x
    scale = L / T
    pos = (jnp.arange(T, dtype=jnp.float32) + 0.5) * scale - 0.5
    pos = jnp.clip(pos, 0.0, None)                      # PyTorch clamps negative src
    i0 = jnp.clip(jnp.floor(pos).astype(jnp.int32), 0, L - 1)
    i1 = jnp.clip(i0 + 1, 0, L - 1)
    w = (pos - i0.astype(jnp.float32))[None, None, :]   # (1, 1, T)
    x0 = x[:, :, i0]
    x1 = x[:, :, i1]
    return x0 * (1.0 - w) + x1 * w


def _choose_query_tile(T, cap=1024):
    """Largest T-tile <= cap.  Full T if small, else a 128-multiple divisor of T."""
    if T <= cap:
        return T
    tq = (cap // 128) * 128
    while tq >= 128:
        if T % tq == 0:
            return tq
        tq -= 128
    return T  # no friendly divisor found -> single tile (still correct)


# --------------------------------------------------------------------------- kernel
def _attn_upsampler_kernel(
    x_ref,     # (1, L, C)   bf16  original input, channels-last
    xi_ref,    # (1, TQ, C)  bf16  interpolated input (query tile), channels-last
    fq_ref,    # (TQ, E)     f32   fixed_query tile
    se_ref,    # (1, E)      f32   scale embedding
    wqi_ref,   # (C, 2E)     bf16  [query_gen conv1 | input_proj] fused
    bqi_ref,   # (1, 2E)     f32
    wqg2_ref,  # (E, E)      bf16  query_gen conv2
    bqg2_ref,  # (1, E)      f32
    wip_ref,   # (C, E)      bf16  input_proj (key/value path on x)
    bip_ref,   # (1, E)      f32
    wq_ref,    # (H, E, hd)  bf16  per-head Q proj, 1/sqrt(hd) folded in
    bq_ref,    # (H, 1, hd)  f32   (scaled)
    wk_ref,    # (H, E, hd)  bf16
    bk_ref,    # (H, 1, hd)  f32
    wv_ref,    # (H, E, hd)  bf16
    bv_ref,    # (H, 1, hd)  f32
    wo_ref,    # (H, C, hd)  bf16  (w_o @ w_out) per head, transposed
    bo_ref,    # (C, 1)      f32   (b_o @ w_out + b_out) transposed
    o_ref,     # (1, C, TQ)  f32   NCL output tile (lane-dense along T)
    k_scr,     # (H, L, hd)  bf16  scratch: per-head keys   (resident per batch)
    v_scr,     # (H, L, hd)  bf16  scratch: per-head values (resident per batch)
):
    f32 = jnp.float32
    bf16 = jnp.bfloat16
    H = wq_ref.shape[0]
    E = wqg2_ref.shape[0]
    C = o_ref.shape[1]
    TQ = o_ref.shape[2]
    # contract the last dim of both operands (i.e. A @ B.T) -- MXU-friendly.
    dims_tb = (((1,), (1,)), ((), ()))

    # ---- K/V for the whole source sequence: compute once per batch element -------
    @pl.when(pl.program_id(1) == 0)
    def _():
        xproj = (jnp.dot(x_ref[0], wip_ref[...], preferred_element_type=f32)
                 + bip_ref[...])                                   # (L, E) f32
        xp = xproj.astype(bf16)
        for h in range(H):
            k_scr[h] = (jnp.dot(xp, wk_ref[h], preferred_element_type=f32)
                        + bk_ref[h]).astype(bf16)                  # (L, hd)
            v_scr[h] = (jnp.dot(xp, wv_ref[h], preferred_element_type=f32)
                        + bv_ref[h]).astype(bf16)                  # (L, hd)

    # ---- query side (per T tile) --------------------------------------------------
    xi = xi_ref[0]                                                 # (TQ, C) bf16
    fused = (jnp.dot(xi, wqi_ref[...], preferred_element_type=f32)
             + bqi_ref[...])                                       # (TQ, 2E) f32
    hq = jnp.maximum(fused[:, :E], 0.0)                            # query_gen hidden
    resid = fused[:, E:]                                           # input_proj(x_interp)
    dynq = (jnp.dot(hq.astype(bf16), wqg2_ref[...], preferred_element_type=f32)
            + bqg2_ref[...])                                       # (TQ, E) f32
    final_q = fq_ref[...] + dynq + resid + se_ref[...]             # (TQ, E) f32
    fqb = final_q.astype(bf16)

    # ---- per-head attention, accumulated directly into the (C, TQ) output tile ----
    out_t = jnp.zeros((C, TQ), f32)
    for h in range(H):
        q_h = (jnp.dot(fqb, wq_ref[h], preferred_element_type=f32)
               + bq_ref[h]).astype(bf16)                           # (TQ, hd), pre-scaled
        s = lax.dot_general(q_h, k_scr[h], dims_tb,
                            preferred_element_type=f32)            # (TQ, L)
        s = s - jnp.max(s, axis=-1, keepdims=True)
        p = jnp.exp(s)
        p = p * pl.reciprocal(jnp.sum(p, axis=-1, keepdims=True), approx=True)
        ctx = jnp.dot(p.astype(bf16), v_scr[h],
                      preferred_element_type=f32)                  # (TQ, hd)
        out_t = out_t + lax.dot_general(wo_ref[h], ctx.astype(bf16), dims_tb,
                                        preferred_element_type=f32)  # (C, TQ)

    o_ref[0] = (out_t + bo_ref[...]).astype(o_ref.dtype)


# ----------------------------------------------------------------- weight preparation
def _prep_weights(params, num_heads):
    C, E = params["w_ip"].shape
    H = num_heads
    hd = E // H
    bf16 = jnp.bfloat16
    scale = 1.0 / math.sqrt(hd)

    def split_heads_w(w):   # (E, E) -> (H, E, hd)
        return jnp.transpose(w.reshape(E, H, hd), (1, 0, 2))

    def split_heads_b(b):   # (1, E) -> (H, 1, hd)
        return jnp.transpose(b.reshape(1, H, hd), (1, 0, 2))

    # fuse query_generator conv1 and input_proj over x_interp into one matmul
    w_qi = jnp.concatenate([params["w_qg1"], params["w_ip"]], axis=1)    # (C, 2E)
    b_qi = jnp.concatenate([params["b_qg1"], params["b_ip"]], axis=1)    # (1, 2E)

    # fold MHA out-proj into the module out_proj:  (attn@w_o+b_o)@w_out+b_out
    wo_fold = params["w_o"] @ params["w_out"]                            # (E, C)
    wo_ft = jnp.transpose(wo_fold.reshape(H, hd, C), (0, 2, 1))          # (H, C, hd)
    bo_ft = jnp.transpose(params["b_o"] @ params["w_out"] + params["b_out"])  # (C, 1)

    return dict(
        w_qi=w_qi.astype(bf16), b_qi=b_qi,
        w_qg2=params["w_qg2"].astype(bf16), b_qg2=params["b_qg2"],
        w_ip=params["w_ip"].astype(bf16), b_ip=params["b_ip"],
        w_q=(split_heads_w(params["w_q"]) * scale).astype(bf16),
        b_q=split_heads_b(params["b_q"]) * scale,
        w_k=split_heads_w(params["w_k"]).astype(bf16), b_k=split_heads_b(params["b_k"]),
        w_v=split_heads_w(params["w_v"]).astype(bf16), b_v=split_heads_b(params["b_v"]),
        w_of=wo_ft.astype(bf16), b_of=bo_ft,
    )


# -------------------------------------------------------------------------- wrapper
def attention_upsampler_forward(params, x_ncl, target_length, scale_value, num_heads):
    B, C, L = x_ncl.shape
    E = params["w_ip"].shape[1]
    assert E % num_heads == 0
    H, hd = num_heads, E // num_heads
    T = int(target_length)
    TQ = _choose_query_tile(T)
    n_t = T // TQ

    # tiny glue (XLA): interpolation gather, layout to channels-last, scalar MLP
    xi_ncl = linear_interpolate_ncl(x_ncl, T)                       # (B, C, T)
    xi_btc = jnp.transpose(xi_ncl, (0, 2, 1)).astype(jnp.bfloat16)  # (B, T, C)
    x_blc = jnp.transpose(x_ncl, (0, 2, 1)).astype(jnp.bfloat16)    # (B, L, C)

    raw = jnp.array([[scale_value]], dtype=jnp.float32)             # (1, 1)
    se = jnp.maximum(raw @ params["w_s1"] + params["b_s1"], 0.0)
    se = se @ params["w_s2"] + params["b_s2"]                       # (1, E)

    fq = params["fixed_query"][:T, :]                               # (T, E)

    w = _prep_weights(params, num_heads)

    def const_spec(shape):
        nd = len(shape)
        return pl.BlockSpec(shape, lambda b, t, _nd=nd: (0,) * _nd)

    out = pl.pallas_call(
        _attn_upsampler_kernel,
        out_shape=jax.ShapeDtypeStruct((B, C, T), jnp.float32),
        grid_spec=pltpu.PrefetchScalarGridSpec(
            num_scalar_prefetch=0,
            grid=(B, n_t),
            in_specs=[
                pl.BlockSpec((1, L, C), lambda b, t: (b, 0, 0)),    # x
                pl.BlockSpec((1, TQ, C), lambda b, t: (b, t, 0)),   # x_interp tile
                pl.BlockSpec((TQ, E), lambda b, t: (t, 0)),         # fixed_query tile
                const_spec((1, E)),                                 # scale emb
                const_spec((C, 2 * E)), const_spec((1, 2 * E)),     # fused qg1|input_proj
                const_spec((E, E)), const_spec((1, E)),             # query_gen conv2
                const_spec((C, E)), const_spec((1, E)),             # input_proj (K/V path)
                const_spec((H, E, hd)), const_spec((H, 1, hd)),     # Q (scaled)
                const_spec((H, E, hd)), const_spec((H, 1, hd)),     # K
                const_spec((H, E, hd)), const_spec((H, 1, hd)),     # V
                const_spec((H, C, hd)),                             # folded out proj
                const_spec((C, 1)),                                 # folded out bias
            ],
            out_specs=pl.BlockSpec((1, C, TQ), lambda b, t: (b, 0, t)),
            scratch_shapes=[
                pltpu.VMEM((H, L, hd), jnp.bfloat16),               # per-head K
                pltpu.VMEM((H, L, hd), jnp.bfloat16),               # per-head V
            ],
        ),
        compiler_params=pltpu.CompilerParams(
            dimension_semantics=("parallel", "arbitrary"),
            vmem_limit_bytes=32 * 1024 * 1024,
        ),
    )(
        x_blc, xi_btc, fq, se,
        w["w_qi"], w["b_qi"],
        w["w_qg2"], w["b_qg2"],
        w["w_ip"], w["b_ip"],
        w["w_q"], w["b_q"],
        w["w_k"], w["b_k"],
        w["w_v"], w["b_v"],
        w["w_of"], w["b_of"],
    )
    return out                                                      # (B, C_in, T)  NCL


# ----------------------------------------------------------------- pure-JAX reference
def reference_forward(params, x_ncl, target_length, scale_value, num_heads):
    B, C, L = x_ncl.shape
    E = params["w_ip"].shape[1]
    T = int(target_length)
    xi_btc = jnp.transpose(linear_interpolate_ncl(x_ncl, T), (0, 2, 1))
    x_blc = jnp.transpose(x_ncl, (0, 2, 1))

    h = jnp.maximum(xi_btc @ params["w_qg1"] + params["b_qg1"], 0.0)
    dynq = h @ params["w_qg2"] + params["b_qg2"]
    resid = xi_btc @ params["w_ip"] + params["b_ip"]
    raw = jnp.array([[scale_value]], dtype=jnp.float32)
    se = jnp.maximum(raw @ params["w_s1"] + params["b_s1"], 0.0) @ params["w_s2"] + params["b_s2"]
    fq = params["fixed_query"][:T, :]
    final_q = fq[None] + dynq + resid + se[None]                      # (B, T, E)

    xproj = x_blc @ params["w_ip"] + params["b_ip"]                   # (B, L, E)
    q = final_q @ params["w_q"] + params["b_q"]
    k = xproj @ params["w_k"] + params["b_k"]
    v = xproj @ params["w_v"] + params["b_v"]
    hd = E // num_heads
    qh = q.reshape(B, T, num_heads, hd).transpose(0, 2, 1, 3)
    kh = k.reshape(B, L, num_heads, hd).transpose(0, 2, 1, 3)
    vh = v.reshape(B, L, num_heads, hd).transpose(0, 2, 1, 3)
    s = jnp.einsum("bhtd,bhld->bhtl", qh, kh) / math.sqrt(hd)
    p = jax.nn.softmax(s, axis=-1)
    o = jnp.einsum("bhtl,bhld->bhtd", p, vh).transpose(0, 2, 1, 3).reshape(B, T, E)
    o = o @ params["w_o"] + params["b_o"]
    out = o @ params["w_out"] + params["b_out"]
    return jnp.transpose(out, (0, 2, 1))


# ----------------------------------------------------------------------------- main
def init_params(key, in_channels, embed_dim, max_length):
    ks = jax.random.split(key, 21)
    n = lambda k, shape, s=0.2: jax.random.normal(k, shape, jnp.float32) * s
    C, E = in_channels, embed_dim
    return dict(
        w_ip=n(ks[0], (C, E)),   b_ip=n(ks[1], (1, E)),
        w_qg1=n(ks[2], (C, E)),  b_qg1=n(ks[3], (1, E)),
        w_qg2=n(ks[4], (E, E)),  b_qg2=n(ks[5], (1, E)),
        w_q=n(ks[6], (E, E)),    b_q=n(ks[7], (1, E)),
        w_k=n(ks[8], (E, E)),    b_k=n(ks[9], (1, E)),
        w_v=n(ks[10], (E, E)),   b_v=n(ks[11], (1, E)),
        w_o=n(ks[12], (E, E)),   b_o=n(ks[13], (1, E)),
        w_out=n(ks[14], (E, C)), b_out=n(ks[15], (1, C)),
        fixed_query=jax.random.normal(ks[16], (max_length, E), jnp.float32),
        w_s1=n(ks[17], (1, E)),  b_s1=n(ks[18], (1, E)),
        w_s2=n(ks[19], (E, E)),  b_s2=n(ks[20], (1, E)),
    )


if __name__ == "__main__":
    B, C_in, L = 2, 4, 8
    embed_dim, num_heads, max_length = 32, 4, 64
    target_length = 16
    scale_value = 2.0

    key = jax.random.PRNGKey(0)
    pkey, xkey = jax.random.split(key)
    params = init_params(pkey, C_in, embed_dim, max_length)
    x = jax.random.normal(xkey, (B, C_in, L), jnp.float32)   # PyTorch NCL input

    out = attention_upsampler_forward(params, x, target_length, scale_value, num_heads)
    out = jax.block_until_ready(out)

    ref = reference_forward(params, x, target_length, scale_value, num_heads)
    assert out.shape == (B, C_in, target_length), out.shape
    # Tolerance covers bf16 MXU inputs + approximate softmax reciprocal (f32 accumulation).
    assert jnp.allclose(out, ref, rtol=2e-2, atol=2e-2), "mismatch vs pure-JAX reference"

    print("KERNEL_OK")
</pallas_src>

<mosaic_0001>
module attributes {stable_mosaic.version = 11 : i64} {
  func.func @_attn_upsampler_kernel(%arg0: i32, %arg1: i32, %arg2: memref<1x8x4xbf16, #tpu.memory_space<vmem>>, %arg3: memref<1x16x4xbf16, #tpu.memory_space<vmem>>, %arg4: memref<16x32xf32, #tpu.memory_space<vmem>>, %arg5: memref<1x32xf32, #tpu.memory_space<vmem>>, %arg6: memref<4x64xbf16, #tpu.memory_space<vmem>>, %arg7: memref<1x64xf32, #tpu.memory_space<vmem>>, %arg8: memref<32x32xbf16, #tpu.memory_space<vmem>>, %arg9: memref<1x32xf32, #tpu.memory_space<vmem>>, %arg10: memref<4x32xbf16, #tpu.memory_space<vmem>>, %arg11: memref<1x32xf32, #tpu.memory_space<vmem>>, %arg12: memref<4x32x8xbf16, #tpu.memory_space<vmem>>, %arg13: memref<4x1x8xf32, #tpu.memory_space<vmem>>, %arg14: memref<4x32x8xbf16, #tpu.memory_space<vmem>>, %arg15: memref<4x1x8xf32, #tpu.memory_space<vmem>>, %arg16: memref<4x32x8xbf16, #tpu.memory_space<vmem>>, %arg17: memref<4x1x8xf32, #tpu.memory_space<vmem>>, %arg18: memref<4x4x8xbf16, #tpu.memory_space<vmem>>, %arg19: memref<4x1xf32, #tpu.memory_space<vmem>>, %arg20: memref<1x4x16xf32, #tpu.memory_space<vmem>>, %arg21: memref<4x8x8xbf16, #tpu.memory_space<vmem>>, %arg22: memref<4x8x8xbf16, #tpu.memory_space<vmem>>) attributes {dimension_semantics = [#tpu.dimension_semantics<parallel>, #tpu.dimension_semantics<arbitrary>], iteration_bounds = array<i64: 2, 1>, scalar_prefetch = 0 : i64, scratch_operands = 2 : i64, tpu.core_type = #tpu.core_type<tc>, window_params = [{transform_indices = @transform_0, window_bounds = array<i64: 1, 8, 4>}, {transform_indices = @transform_1, window_bounds = array<i64: 1, 16, 4>}, {transform_indices = @transform_2, window_bounds = array<i64: 16, 32>}, {pipeline_mode = #tpu.pipeline_mode<synchronous>, transform_indices = @transform_3, window_bounds = array<i64: 1, 32>}, {pipeline_mode = #tpu.pipeline_mode<synchronous>, transform_indices = @transform_4, window_bounds = array<i64: 4, 64>}, {pipeline_mode = #tpu.pipeline_mode<synchronous>, transform_indices = @transform_5, window_bounds = array<i64: 1, 64>}, {pipeline_mode = #tpu.pipeline_mode<synchronous>, transform_indices = @transform_6, window_bounds = array<i64: 32, 32>}, {pipeline_mode = #tpu.pipeline_mode<synchronous>, transform_indices = @transform_7, window_bounds = array<i64: 1, 32>}, {pipeline_mode = #tpu.pipeline_mode<synchronous>, transform_indices = @transform_8, window_bounds = array<i64: 4, 32>}, {pipeline_mode = #tpu.pipeline_mode<synchronous>, transform_indices = @transform_9, window_bounds = array<i64: 1, 32>}, {pipeline_mode = #tpu.pipeline_mode<synchronous>, transform_indices = @transform_10, window_bounds = array<i64: 4, 32, 8>}, {pipeline_mode = #tpu.pipeline_mode<synchronous>, transform_indices = @transform_11, window_bounds = array<i64: 4, 1, 8>}, {pipeline_mode = #tpu.pipeline_mode<synchronous>, transform_indices = @transform_12, window_bounds = array<i64: 4, 32, 8>}, {pipeline_mode = #tpu.pipeline_mode<synchronous>, transform_indices = @transform_13, window_bounds = array<i64: 4, 1, 8>}, {pipeline_mode = #tpu.pipeline_mode<synchronous>, transform_indices = @transform_14, window_bounds = array<i64: 4, 32, 8>}, {pipeline_mode = #tpu.pipeline_mode<synchronous>, transform_indices = @transform_15, window_bounds = array<i64: 4, 1, 8>}, {pipeline_mode = #tpu.pipeline_mode<synchronous>, transform_indices = @transform_16, window_bounds = array<i64: 4, 4, 8>}, {pipeline_mode = #tpu.pipeline_mode<synchronous>, transform_indices = @transform_17, window_bounds = array<i64: 4, 1>}, {transform_indices = @transform_18, window_bounds = array<i64: 1, 4, 16>}]} {
    %c0_i32 = arith.constant 0 : i32
    %0 = arith.cmpi eq, %arg1, %c0_i32 : i32
    %1 = arith.extui %0 : i1 to i32
    %c0_i32_0 = arith.constant 0 : i32
    %2 = arith.cmpi ne, %1, %c0_i32_0 : i32
    scf.if %2 {
      %c0_104 = arith.constant 0 : index
      %c0_105 = arith.constant 0 : index
      %c0_106 = arith.constant 0 : index
      %154 = vector.load %arg2[%c0_104, %c0_105, %c0_106] : memref<1x8x4xbf16, #tpu.memory_space<vmem>>, vector<1x8x4xbf16>
      %155 = vector.shape_cast %154 : vector<1x8x4xbf16> to vector<8x4xbf16>
      %c0_107 = arith.constant 0 : index
      %c0_108 = arith.constant 0 : index
      %156 = vector.load %arg10[%c0_107, %c0_108] : memref<4x32xbf16, #tpu.memory_space<vmem>>, vector<4x32xbf16>
      %cst_109 = arith.constant dense<0.000000e+00> : vector<8x32xf32>
      %157 = tpu.matmul %155, %156, %cst_109 {dimension_numbers = #tpu.dot_dimension_numbers<[1], [0], [0], [1], [0, 0, 1, 1], [], []>} : vector<8x4xbf16>, vector<4x32xbf16>, vector<8x32xf32> -> vector<8x32xf32>
      %c0_110 = arith.constant 0 : index
      %c0_111 = arith.constant 0 : index
      %158 = vector.load %arg11[%c0_110, %c0_111] : memref<1x32xf32, #tpu.memory_space<vmem>>, vector<1x32xf32>
      %159 = vector.broadcast %158 : vector<1x32xf32> to vector<8x32xf32>
      %160 = arith.addf %157, %159 : vector<8x32xf32>
      %161 = arith.truncf %160 : vector<8x32xf32> to vector<8x32xbf16>
      %c0_112 = arith.constant 0 : index
      %c0_113 = arith.constant 0 : index
      %c0_114 = arith.constant 0 : index
      %162 = vector.load %arg14[%c0_112, %c0_113, %c0_114] : memref<4x32x8xbf16, #tpu.memory_space<vmem>>, vector<1x32x8xbf16>
      %163 = vector.shape_cast %162 : vector<1x32x8xbf16> to vector<32x8xbf16>
      %cst_115 = arith.constant dense<0.000000e+00> : vector<8x8xf32>
      %164 = tpu.matmul %161, %163, %cst_115 {dimension_numbers = #tpu.dot_dimension_numbers<[1], [0], [0], [1], [0, 0, 1, 1], [], []>} : vector<8x32xbf16>, vector<32x8xbf16>, vector<8x8xf32> -> vector<8x8xf32>
      %c0_116 = arith.constant 0 : index
      %c0_117 = arith.constant 0 : index
      %c0_118 = arith.constant 0 : index
      %165 = vector.load %arg15[%c0_116, %c0_117, %c0_118] : memref<4x1x8xf32, #tpu.memory_space<vmem>>, vector<1x1x8xf32>
      %166 = vector.shape_cast %165 : vector<1x1x8xf32> to vector<1x8xf32>
      %167 = vector.broadcast %166 : vector<1x8xf32> to vector<8x8xf32>
      %168 = arith.addf %164, %167 : vector<8x8xf32>
      %169 = arith.truncf %168 : vector<8x8xf32> to vector<8x8xbf16>
      %c0_119 = arith.constant 0 : index
      %c0_120 = arith.constant 0 : index
      %c0_121 = arith.constant 0 : index
      %170 = vector.load %arg21[%c0_119, %c0_120, %c0_121] : memref<4x8x8xbf16, #tpu.memory_space<vmem>>, vector<1x8x8xbf16>
      %171 = vector.shape_cast %170 : vector<1x8x8xbf16> to vector<8x8xbf16>
      %172 = vector.shape_cast %169 : vector<8x8xbf16> to vector<1x8x8xbf16>
      tpu.vector_store %arg21[%c0_119, %c0_120, %c0_121], %172 {strides = array<i32>} : memref<4x8x8xbf16, #tpu.memory_space<vmem>>, vector<1x8x8xbf16>,
      %c0_122 = arith.constant 0 : index
      %c0_123 = arith.constant 0 : index
      %c0_124 = arith.constant 0 : index
      %173 = vector.load %arg16[%c0_122, %c0_123, %c0_124] : memref<4x32x8xbf16, #tpu.memory_space<vmem>>, vector<1x32x8xbf16>
      %174 = vector.shape_cast %173 : vector<1x32x8xbf16> to vector<32x8xbf16>
      %cst_125 = arith.constant dense<0.000000e+00> : vector<8x8xf32>
      %175 = tpu.matmul %161, %174, %cst_125 {dimension_numbers = #tpu.dot_dimension_numbers<[1], [0], [0], [1], [0, 0, 1, 1], [], []>} : vector<8x32xbf16>, vector<32x8xbf16>, vector<8x8xf32> -> vector<8x8xf32>
      %c0_126 = arith.constant 0 : index
      %c0_127 = arith.constant 0 : index
      %c0_128 = arith.constant 0 : index
      %176 = vector.load %arg17[%c0_126, %c0_127, %c0_128] : memref<4x1x8xf32, #tpu.memory_space<vmem>>, vector<1x1x8xf32>
      %177 = vector.shape_cast %176 : vector<1x1x8xf32> to vector<1x8xf32>
      %178 = vector.broadcast %177 : vector<1x8xf32> to vector<8x8xf32>
      %179 = arith.addf %175, %178 : vector<8x8xf32>
      %180 = arith.truncf %179 : vector<8x8xf32> to vector<8x8xbf16>
      %c0_129 = arith.constant 0 : index
      %c0_130 = arith.constant 0 : index
      %c0_131 = arith.constant 0 : index
      %181 = vector.load %arg22[%c0_129, %c0_130, %c0_131] : memref<4x8x8xbf16, #tpu.memory_space<vmem>>, vector<1x8x8xbf16>
      %182 = vector.shape_cast %181 : vector<1x8x8xbf16> to vector<8x8xbf16>
      %183 = vector.shape_cast %180 : vector<8x8xbf16> to vector<1x8x8xbf16>
      tpu.vector_store %arg22[%c0_129, %c0_130, %c0_131], %183 {strides = array<i32>} : memref<4x8x8xbf16, #tpu.memory_space<vmem>>, vector<1x8x8xbf16>,
      %c1_132 = arith.constant 1 : index
      %c0_133 = arith.constant 0 : index
      %c0_134 = arith.constant 0 : index
      %184 = vector.load %arg14[%c1_132, %c0_133, %c0_134] : memref<4x32x8xbf16, #tpu.memory_space<vmem>>, vector<1x32x8xbf16>
      %185 = vector.shape_cast %184 : vector<1x32x8xbf16> to vector<32x8xbf16>
      %cst_135 = arith.constant dense<0.000000e+00> : vector<8x8xf32>
      %186 = tpu.matmul %161, %185, %cst_135 {dimension_numbers = #tpu.dot_dimension_numbers<[1], [0], [0], [1], [0, 0, 1, 1], [], []>} : vector<8x32xbf16>, vector<32x8xbf16>, vector<8x8xf32> -> vector<8x8xf32>
      %c1_136 = arith.constant 1 : index
      %c0_137 = arith.constant 0 : index
      %c0_138 = arith.constant 0 : index
      %187 = vector.load %arg15[%c1_136, %c0_137, %c0_138] : memref<4x1x8xf32, #tpu.memory_space<vmem>>, vector<1x1x8xf32>
      %188 = vector.shape_cast %187 : vector<1x1x8xf32> to vector<1x8xf32>
      %189 = vector.broadcast %188 : vector<1x8xf32> to vector<8x8xf32>
      %190 = arith.addf %186, %189 : vector<8x8xf32>
      %191 = arith.truncf %190 : vector<8x8xf32> to vector<8x8xbf16>
      %c1_139 = arith.constant 1 : index
      %c0_140 = arith.constant 0 : index
      %c0_141 = arith.constant 0 : index
      %192 = vector.load %arg21[%c1_139, %c0_140, %c0_141] : memref<4x8x8xbf16, #tpu.memory_space<vmem>>, vector<1x8x8xbf16>
      %193 = vector.shape_cast %192 : vector<1x8x8xbf16> to vector<8x8xbf16>
      %194 = vector.shape_cast %191 : vector<8x8xbf16> to vector<1x8x8xbf16>
      tpu.vector_store %arg21[%c1_139, %c0_140, %c0_141], %194 {strides = array<i32>} : memref<4x8x8xbf16, #tpu.memory_space<vmem>>, vector<1x8x8xbf16>,
      %c1_142 = arith.constant 1 : index
      %c0_143 = arith.constant 0 : index
      %c0_144 = arith.constant 0 : index
      %195 = vector.load %arg16[%c1_142, %c0_143, %c0_144] : memref<4x32x8xbf16, #tpu.memory_space<vmem>>, vector<1x32x8xbf16>
      %196 = vector.shape_cast %195 : vector<1x32x8xbf16> to vector<32x8xbf16>
      %cst_145 = arith.constant dense<0.000000e+00> : vector<8x8xf32>
      %197 = tpu.matmul %161, %196, %cst_145 {dimension_numbers = #tpu.dot_dimension_numbers<[1], [0], [0], [1], [0, 0, 1, 1], [], []>} : vector<8x32xbf16>, vector<32x8xbf16>, vector<8x8xf32> -> vector<8x8xf32>
      %c1_146 = arith.constant 1 : index
      %c0_147 = arith.constant 0 : index
      %c0_148 = arith.constant 0 : index
      %198 = vector.load %arg17[%c1_146, %c0_147, %c0_148] : memref<4x1x8xf32, #tpu.memory_space<vmem>>, vector<1x1x8xf32>
      %199 = vector.shape_cast %198 : vector<1x1x8xf32> to vector<1x8xf32>
      %200 = vector.broadcast %199 : vector<1x8xf32> to vector<8x8xf32>
      %201 = arith.addf %197, %200 : vector<8x8xf32>
      %202 = arith.truncf %201 : vector<8x8xf32> to vector<8x8xbf16>
      %c1_149 = arith.constant 1 : index
      %c0_150 = arith.constant 0 : index
      %c0_151 = arith.constant 0 : index
      %203 = vector.load %arg22[%c1_149, %c0_150, %c0_151] : memref<4x8x8xbf16, #tpu.memory_space<vmem>>, vector<1x8x8xbf16>
      %204 = vector.shape_cast %203 : vector<1x8x8xbf16> to vector<8x8xbf16>
      %205 = vector.shape_cast %202 : vector<8x8xbf16> to vector<1x8x8xbf16>
      tpu.vector_store %arg22[%c1_149, %c0_150, %c0_151], %205 {strides = array<i32>} : memref<4x8x8xbf16, #tpu.memory_space<vmem>>, vector<1x8x8xbf16>,
      %c2_152 = arith.constant 2 : index
      %c0_153 = arith.constant 0 : index
      %c0_154 = arith.constant 0 : index
      %206 = vector.load %arg14[%c2_152, %c0_153, %c0_154] : memref<4x32x8xbf16, #tpu.memory_space<vmem>>, vector<1x32x8xbf16>
      %207 = vector.shape_cast %206 : vector<1x32x8xbf16> to vector<32x8xbf16>
      %cst_155 = arith.constant dense<0.000000e+00> : vector<8x8xf32>
      %208 = tpu.matmul %161, %207, %cst_155 {dimension_numbers = #tpu.dot_dimension_numbers<[1], [0], [0], [1], [0, 0, 1, 1], [], []>} : vector<8x32xbf16>, vector<32x8xbf16>, vector<8x8xf32> -> vector<8x8xf32>
      %c2_156 = arith.constant 2 : index
      %c0_157 = arith.constant 0 : index
      %c0_158 = arith.constant 0 : index
      %209 = vector.load %arg15[%c2_156, %c0_157, %c0_158] : memref<4x1x8xf32, #tpu.memory_space<vmem>>, vector<1x1x8xf32>
      %210 = vector.shape_cast %209 : vector<1x1x8xf32> to vector<1x8xf32>
      %211 = vector.broadcast %210 : vector<1x8xf32> to vector<8x8xf32>
      %212 = arith.addf %208, %211 : vector<8x8xf32>
      %213 = arith.truncf %212 : vector<8x8xf32> to vector<8x8xbf16>
      %c2_159 = arith.constant 2 : index
      %c0_160 = arith.constant 0 : index
      %c0_161 = arith.constant 0 : index
      %214 = vector.load %arg21[%c2_159, %c0_160, %c0_161] : memref<4x8x8xbf16, #tpu.memory_space<vmem>>, vector<1x8x8xbf16>
      %215 = vector.shape_cast %214 : vector<1x8x8xbf16> to vector<8x8xbf16>
      %216 = vector.shape_cast %213 : vector<8x8xbf16> to vector<1x8x8xbf16>
      tpu.vector_store %arg21[%c2_159, %c0_160, %c0_161], %216 {strides = array<i32>} : memref<4x8x8xbf16, #tpu.memory_space<vmem>>, vector<1x8x8xbf16>,
      %c2_162 = arith.constant 2 : index
      %c0_163 = arith.constant 0 : index
      %c0_164 = arith.constant 0 : index
      %217 = vector.load %arg16[%c2_162, %c0_163, %c0_164] : memref<4x32x8xbf16, #tpu.memory_space<vmem>>, vector<1x32x8xbf16>
      %218 = vector.shape_cast %217 : vector<1x32x8xbf16> to vector<32x8xbf16>
      %cst_165 = arith.constant dense<0.000000e+00> : vector<8x8xf32>
      %219 = tpu.matmul %161, %218, %cst_165 {dimension_numbers = #tpu.dot_dimension_numbers<[1], [0], [0], [1], [0, 0, 1, 1], [], []>} : vector<8x32xbf16>, vector<32x8xbf16>, vector<8x8xf32> -> vector<8x8xf32>
      %c2_166 = arith.constant 2 : index
      %c0_167 = arith.constant 0 : index
      %c0_168 = arith.constant 0 : index
      %220 = vector.load %arg17[%c2_166, %c0_167, %c0_168] : memref<4x1x8xf32, #tpu.memory_space<vmem>>, vector<1x1x8xf32>
      %221 = vector.shape_cast %220 : vector<1x1x8xf32> to vector<1x8xf32>
      %222 = vector.broadcast %221 : vector<1x8xf32> to vector<8x8xf32>
      %223 = arith.addf %219, %222 : vector<8x8xf32>
      %224 = arith.truncf %223 : vector<8x8xf32> to vector<8x8xbf16>
      %c2_169 = arith.constant 2 : index
      %c0_170 = arith.constant 0 : index
      %c0_171 = arith.constant 0 : index
      %225 = vector.load %arg22[%c2_169, %c0_170, %c0_171] : memref<4x8x8xbf16, #tpu.memory_space<vmem>>, vector<1x8x8xbf16>
      %226 = vector.shape_cast %225 : vector<1x8x8xbf16> to vector<8x8xbf16>
      %227 = vector.shape_cast %224 : vector<8x8xbf16> to vector<1x8x8xbf16>
      tpu.vector_store %arg22[%c2_169, %c0_170, %c0_171], %227 {strides = array<i32>} : memref<4x8x8xbf16, #tpu.memory_space<vmem>>, vector<1x8x8xbf16>,
      %c3_172 = arith.constant 3 : index
      %c0_173 = arith.constant 0 : index
      %c0_174 = arith.constant 0 : index
      %228 = vector.load %arg14[%c3_172, %c0_173, %c0_174] : memref<4x32x8xbf16, #tpu.memory_space<vmem>>, vector<1x32x8xbf16>
      %229 = vector.shape_cast %228 : vector<1x32x8xbf16> to vector<32x8xbf16>
      %cst_175 = arith.constant dense<0.000000e+00> : vector<8x8xf32>
      %230 = tpu.matmul %161, %229, %cst_175 {dimension_numbers = #tpu.dot_dimension_numbers<[1], [0], [0], [1], [0, 0, 1, 1], [], []>} : vector<8x32xbf16>, vector<32x8xbf16>, vector<8x8xf32> -> vector<8x8xf32>
      %c3_176 = arith.constant 3 : index
      %c0_177 = arith.constant 0 : index
      %c0_178 = arith.constant 0 : index
      %231 = vector.load %arg15[%c3_176, %c0_177, %c0_178] : memref<4x1x8xf32, #tpu.memory_space<vmem>>, vector<1x1x8xf32>
      %232 = vector.shape_cast %231 : vector<1x1x8xf32> to vector<1x8xf32>
      %233 = vector.broadcast %232 : vector<1x8xf32> to vector<8x8xf32>
      %234 = arith.addf %230, %233 : vector<8x8xf32>
      %235 = arith.truncf %234 : vector<8x8xf32> to vector<8x8xbf16>
      %c3_179 = arith.constant 3 : index
      %c0_180 = arith.constant 0 : index
      %c0_181 = arith.constant 0 : index
      %236 = vector.load %arg21[%c3_179, %c0_180, %c0_181] : memref<4x8x8xbf16, #tpu.memory_space<vmem>>, vector<1x8x8xbf16>
      %237 = vector.shape_cast %236 : vector<1x8x8xbf16> to vector<8x8xbf16>
      %238 = vector.shape_cast %235 : vector<8x8xbf16> to vector<1x8x8xbf16>
      tpu.vector_store %arg21[%c3_179, %c0_180, %c0_181], %238 {strides = array<i32>} : memref<4x8x8xbf16, #tpu.memory_space<vmem>>, vector<1x8x8xbf16>,
      %c3_182 = arith.constant 3 : index
      %c0_183 = arith.constant 0 : index
      %c0_184 = arith.constant 0 : index
      %239 = vector.load %arg16[%c3_182, %c0_183, %c0_184] : memref<4x32x8xbf16, #tpu.memory_space<vmem>>, vector<1x32x8xbf16>
      %240 = vector.shape_cast %239 : vector<1x32x8xbf16> to vector<32x8xbf16>
      %cst_185 = arith.constant dense<0.000000e+00> : vector<8x8xf32>
      %241 = tpu.matmul %161, %240, %cst_185 {dimension_numbers = #tpu.dot_dimension_numbers<[1], [0], [0], [1], [0, 0, 1, 1], [], []>} : vector<8x32xbf16>, vector<32x8xbf16>, vector<8x8xf32> -> vector<8x8xf32>
      %c3_186 = arith.constant 3 : index
      %c0_187 = arith.constant 0 : index
      %c0_188 = arith.constant 0 : index
      %242 = vector.load %arg17[%c3_186, %c0_187, %c0_188] : memref<4x1x8xf32, #tpu.memory_space<vmem>>, vector<1x1x8xf32>
      %243 = vector.shape_cast %242 : vector<1x1x8xf32> to vector<1x8xf32>
      %244 = vector.broadcast %243 : vector<1x8xf32> to vector<8x8xf32>
      %245 = arith.addf %241, %244 : vector<8x8xf32>
      %246 = arith.truncf %245 : vector<8x8xf32> to vector<8x8xbf16>
      %c3_189 = arith.constant 3 : index
      %c0_190 = arith.constant 0 : index
      %c0_191 = arith.constant 0 : index
      %247 = vector.load %arg22[%c3_189, %c0_190, %c0_191] : memref<4x8x8xbf16, #tpu.memory_space<vmem>>, vector<1x8x8xbf16>
      %248 = vector.shape_cast %247 : vector<1x8x8xbf16> to vector<8x8xbf16>
      %249 = vector.shape_cast %246 : vector<8x8xbf16> to vector<1x8x8xbf16>
      tpu.vector_store %arg22[%c3_189, %c0_190, %c0_191], %249 {strides = array<i32>} : memref<4x8x8xbf16, #tpu.memory_space<vmem>>, vector<1x8x8xbf16>,
    } else {
    }
    %c0 = arith.constant 0 : index
    %c0_1 = arith.constant 0 : index
    %c0_2 = arith.constant 0 : index
    %3 = vector.load %arg3[%c0, %c0_1, %c0_2] : memref<1x16x4xbf16, #tpu.memory_space<vmem>>, vector<1x16x4xbf16>
    %4 = vector.shape_cast %3 : vector<1x16x4xbf16> to vector<16x4xbf16>
    %c0_3 = arith.constant 0 : index
    %c0_4 = arith.constant 0 : index
    %5 = vector.load %arg6[%c0_3, %c0_4] : memref<4x64xbf16, #tpu.memory_space<vmem>>, vector<4x64xbf16>
    %cst = arith.constant dense<0.000000e+00> : vector<16x64xf32>
    %6 = tpu.matmul %4, %5, %cst {dimension_numbers = #tpu.dot_dimension_numbers<[1], [0], [0], [1], [0, 0, 1, 1], [], []>} : vector<16x4xbf16>, vector<4x64xbf16>, vector<16x64xf32> -> vector<16x64xf32>
    %c0_5 = arith.constant 0 : index
    %c0_6 = arith.constant 0 : index
    %7 = vector.load %arg7[%c0_5, %c0_6] : memref<1x64xf32, #tpu.memory_space<vmem>>, vector<1x64xf32>
    %8 = vector.broadcast %7 : vector<1x64xf32> to vector<16x64xf32>
    %9 = arith.addf %6, %8 : vector<16x64xf32>
    %10 = vector.extract_strided_slice %9 {offsets = [0, 0], sizes = [16, 32], strides = [1, 1]} : vector<16x64xf32> to vector<16x32xf32>
    %cst_7 = arith.constant 0.000000e+00 : f32
    %11 = vector.broadcast %cst_7 : f32 to vector<16x32xf32>
    %12 = arith.maximumf %10, %11 : vector<16x32xf32>
    %13 = vector.extract_strided_slice %9 {offsets = [0, 32], sizes = [16, 32], strides = [1, 1]} : vector<16x64xf32> to vector<16x32xf32>
    %14 = arith.truncf %12 : vector<16x32xf32> to vector<16x32xbf16>
    %c0_8 = arith.constant 0 : index
    %c0_9 = arith.constant 0 : index
    %15 = vector.load %arg8[%c0_8, %c0_9] : memref<32x32xbf16, #tpu.memory_space<vmem>>, vector<32x32xbf16>
    %cst_10 = arith.constant dense<0.000000e+00> : vector<16x32xf32>
    %16 = tpu.matmul %14, %15, %cst_10 {dimension_numbers = #tpu.dot_dimension_numbers<[1], [0], [0], [1], [0, 0, 1, 1], [], []>} : vector<16x32xbf16>, vector<32x32xbf16>, vector<16x32xf32> -> vector<16x32xf32>
    %c0_11 = arith.constant 0 : index
    %c0_12 = arith.constant 0 : index
    %17 = vector.load %arg9[%c0_11, %c0_12] : memref<1x32xf32, #tpu.memory_space<vmem>>, vector<1x32xf32>
    %18 = vector.broadcast %17 : vector<1x32xf32> to vector<16x32xf32>
    %19 = arith.addf %16, %18 : vector<16x32xf32>
    %c0_13 = arith.constant 0 : index
    %c0_14 = arith.constant 0 : index
    %20 = vector.load %arg4[%c0_13, %c0_14] : memref<16x32xf32, #tpu.memory_space<vmem>>, vector<16x32xf32>
    %21 = arith.addf %20, %19 : vector<16x32xf32>
    %22 = arith.addf %21, %13 : vector<16x32xf32>
    %c0_15 = arith.constant 0 : index
    %c0_16 = arith.constant 0 : index
    %23 = vector.load %arg5[%c0_15, %c0_16] : memref<1x32xf32, #tpu.memory_space<vmem>>, vector<1x32xf32>
    %24 = vector.broadcast %23 : vector<1x32xf32> to vector<16x32xf32>
    %25 = arith.addf %22, %24 : vector<16x32xf32>
    %26 = arith.truncf %25 : vector<16x32xf32> to vector<16x32xbf16>
    %cst_17 = arith.constant 0.000000e+00 : f32
    %27 = vector.broadcast %cst_17 : f32 to vector<4x16xf32>
    %c0_18 = arith.constant 0 : index
    %c0_19 = arith.constant 0 : index
    %c0_20 = arith.constant 0 : index
    %28 = vector.load %arg12[%c0_18, %c0_19, %c0_20] : memref<4x32x8xbf16, #tpu.memory_space<vmem>>, vector<1x32x8xbf16>
    %29 = vector.shape_cast %28 : vector<1x32x8xbf16> to vector<32x8xbf16>
    %cst_21 = arith.constant dense<0.000000e+00> : vector<16x8xf32>
    %30 = tpu.matmul %26, %29, %cst_21 {dimension_numbers = #tpu.dot_dimension_numbers<[1], [0], [0], [1], [0, 0, 1, 1], [], []>} : vector<16x32xbf16>, vector<32x8xbf16>, vector<16x8xf32> -> vector<16x8xf32>
    %c0_22 = arith.constant 0 : index
    %c0_23 = arith.constant 0 : index
    %c0_24 = arith.constant 0 : index
    %31 = vector.load %arg13[%c0_22, %c0_23, %c0_24] : memref<4x1x8xf32, #tpu.memory_space<vmem>>, vector<1x1x8xf32>
    %32 = vector.shape_cast %31 : vector<1x1x8xf32> to vector<1x8xf32>
    %33 = vector.broadcast %32 : vector<1x8xf32> to vector<16x8xf32>
    %34 = arith.addf %30, %33 : vector<16x8xf32>
    %35 = arith.truncf %34 : vector<16x8xf32> to vector<16x8xbf16>
    %c0_25 = arith.constant 0 : index
    %c0_26 = arith.constant 0 : index
    %c0_27 = arith.constant 0 : index
    %36 = vector.load %arg21[%c0_25, %c0_26, %c0_27] : memref<4x8x8xbf16, #tpu.memory_space<vmem>>, vector<1x8x8xbf16>
    %37 = vector.shape_cast %36 : vector<1x8x8xbf16> to vector<8x8xbf16>
    %cst_28 = arith.constant dense<0.000000e+00> : vector<16x8xf32>
    %38 = tpu.matmul %35, %37, %cst_28 {dimension_numbers = #tpu.dot_dimension_numbers<[1], [1], [0], [0], [0, 0, 1, 0], [], []>} : vector<16x8xbf16>, vector<8x8xbf16>, vector<16x8xf32> -> vector<16x8xf32>
    %cst_29 = arith.constant dense<0xFF800000> : vector<16xf32>
    %39 = vector.multi_reduction <maximumf>, %38, %cst_29 [1] : vector<16x8xf32> to vector<16xf32>
    %40 = vector.shape_cast %39 : vector<16xf32> to vector<16x1xf32>
    %41 = vector.broadcast %40 : vector<16x1xf32> to vector<16x8xf32>
    %42 = arith.subf %38, %41 : vector<16x8xf32>
    %43 = math.exp %42 : vector<16x8xf32>
    %cst_30 = arith.constant dense<0.000000e+00> : vector<16xf32>
    %44 = vector.multi_reduction <add>, %43, %cst_30 [1] : vector<16x8xf32> to vector<16xf32>
    %45 = vector.shape_cast %44 : vector<16xf32> to vector<16x1xf32>
    %46 = tpu.reciprocal %45 {approx = true} : vector<16x1xf32> -> vector<16x1xf32>
    %47 = vector.broadcast %46 : vector<16x1xf32> to vector<16x8xf32>
    %48 = arith.mulf %43, %47 : vector<16x8xf32>
    %49 = arith.truncf %48 : vector<16x8xf32> to vector<16x8xbf16>
    %c0_31 = arith.constant 0 : index
    %c0_32 = arith.constant 0 : index
    %c0_33 = arith.constant 0 : index
    %50 = vector.load %arg22[%c0_31, %c0_32, %c0_33] : memref<4x8x8xbf16, #tpu.memory_space<vmem>>, vector<1x8x8xbf16>
    %51 = vector.shape_cast %50 : vector<1x8x8xbf16> to vector<8x8xbf16>
    %cst_34 = arith.constant dense<0.000000e+00> : vector<16x8xf32>
    %52 = tpu.matmul %49, %51, %cst_34 {dimension_numbers = #tpu.dot_dimension_numbers<[1], [0], [0], [1], [0, 0, 1, 1], [], []>} : vector<16x8xbf16>, vector<8x8xbf16>, vector<16x8xf32> -> vector<16x8xf32>
    %c0_35 = arith.constant 0 : index
    %c0_36 = arith.constant 0 : index
    %c0_37 = arith.constant 0 : index
    %53 = vector.load %arg18[%c0_35, %c0_36, %c0_37] : memref<4x4x8xbf16, #tpu.memory_space<vmem>>, vector<1x4x8xbf16>
    %54 = vector.shape_cast %53 : vector<1x4x8xbf16> to vector<4x8xbf16>
    %55 = arith.truncf %52 : vector<16x8xf32> to vector<16x8xbf16>
    %cst_38 = arith.constant dense<0.000000e+00> : vector<4x16xf32>
    %56 = tpu.matmul %54, %55, %cst_38 {dimension_numbers = #tpu.dot_dimension_numbers<[1], [1], [0], [0], [0, 0, 1, 0], [], []>} : vector<4x8xbf16>, vector<16x8xbf16>, vector<4x16xf32> -> vector<4x16xf32>
    %57 = arith.addf %27, %56 : vector<4x16xf32>
    %c1 = arith.constant 1 : index
    %c0_39 = arith.constant 0 : index
    %c0_40 = arith.constant 0 : index
    %58 = vector.load %arg12[%c1, %c0_39, %c0_40] : memref<4x32x8xbf16, #tpu.memory_space<vmem>>, vector<1x32x8xbf16>
    %59 = vector.shape_cast %58 : vector<1x32x8xbf16> to vector<32x8xbf16>
    %cst_41 = arith.constant dense<0.000000e+00> : vector<16x8xf32>
    %60 = tpu.matmul %26, %59, %cst_41 {dimension_numbers = #tpu.dot_dimension_numbers<[1], [0], [0], [1], [0, 0, 1, 1], [], []>} : vector<16x32xbf16>, vector<32x8xbf16>, vector<16x8xf32> -> vector<16x8xf32>
    %c1_42 = arith.constant 1 : index
    %c0_43 = arith.constant 0 : index
    %c0_44 = arith.constant 0 : index
    %61 = vector.load %arg13[%c1_42, %c0_43, %c0_44] : memref<4x1x8xf32, #tpu.memory_space<vmem>>, vector<1x1x8xf32>
    %62 = vector.shape_cast %61 : vector<1x1x8xf32> to vector<1x8xf32>
    %63 = vector.broadcast %62 : vector<1x8xf32> to vector<16x8xf32>
    %64 = arith.addf %60, %63 : vector<16x8xf32>
    %65 = arith.truncf %64 : vector<16x8xf32> to vector<16x8xbf16>
    %c1_45 = arith.constant 1 : index
    %c0_46 = arith.constant 0 : index
    %c0_47 = arith.constant 0 : index
    %66 = vector.load %arg21[%c1_45, %c0_46, %c0_47] : memref<4x8x8xbf16, #tpu.memory_space<vmem>>, vector<1x8x8xbf16>
    %67 = vector.shape_cast %66 : vector<1x8x8xbf16> to vector<8x8xbf16>
    %cst_48 = arith.constant dense<0.000000e+00> : vector<16x8xf32>
    %68 = tpu.matmul %65, %67, %cst_48 {dimension_numbers = #tpu.dot_dimension_numbers<[1], [1], [0], [0], [0, 0, 1, 0], [], []>} : vector<16x8xbf16>, vector<8x8xbf16>, vector<16x8xf32> -> vector<16x8xf32>
    %cst_49 = arith.constant dense<0xFF800000> : vector<16xf32>
    %69 = vector.multi_reduction <maximumf>, %68, %cst_49 [1] : vector<16x8xf32> to vector<16xf32>
    %70 = vector.shape_cast %69 : vector<16xf32> to vector<16x1xf32>
    %71 = vector.broadcast %70 : vector<16x1xf32> to vector<16x8xf32>
    %72 = arith.subf %68, %71 : vector<16x8xf32>
    %73 = math.exp %72 : vector<16x8xf32>
    %cst_50 = arith.constant dense<0.000000e+00> : vector<16xf32>
    %74 = vector.multi_reduction <add>, %73, %cst_50 [1] : vector<16x8xf32> to vector<16xf32>
    %75 = vector.shape_cast %74 : vector<16xf32> to vector<16x1xf32>
    %76 = tpu.reciprocal %75 {approx = true} : vector<16x1xf32> -> vector<16x1xf32>
    %77 = vector.broadcast %76 : vector<16x1xf32> to vector<16x8xf32>
    %78 = arith.mulf %73, %77 : vector<16x8xf32>
    %79 = arith.truncf %78 : vector<16x8xf32> to vector<16x8xbf16>
    %c1_51 = arith.constant 1 : index
    %c0_52 = arith.constant 0 : index
    %c0_53 = arith.constant 0 : index
    %80 = vector.load %arg22[%c1_51, %c0_52, %c0_53] : memref<4x8x8xbf16, #tpu.memory_space<vmem>>, vector<1x8x8xbf16>
    %81 = vector.shape_cast %80 : vector<1x8x8xbf16> to vector<8x8xbf16>
    %cst_54 = arith.constant dense<0.000000e+00> : vector<16x8xf32>
    %82 = tpu.matmul %79, %81, %cst_54 {dimension_numbers = #tpu.dot_dimension_numbers<[1], [0], [0], [1], [0, 0, 1, 1], [], []>} : vector<16x8xbf16>, vector<8x8xbf16>, vector<16x8xf32> -> vector<16x8xf32>
    %c1_55 = arith.constant 1 : index
    %c0_56 = arith.constant 0 : index
    %c0_57 = arith.constant 0 : index
    %83 = vector.load %arg18[%c1_55, %c0_56, %c0_57] : memref<4x4x8xbf16, #tpu.memory_space<vmem>>, vector<1x4x8xbf16>
    %84 = vector.shape_cast %83 : vector<1x4x8xbf16> to vector<4x8xbf16>
    %85 = arith.truncf %82 : vector<16x8xf32> to vector<16x8xbf16>
    %cst_58 = arith.constant dense<0.000000e+00> : vector<4x16xf32>
    %86 = tpu.matmul %84, %85, %cst_58 {dimension_numbers = #tpu.dot_dimension_numbers<[1], [1], [0], [0], [0, 0, 1, 0], [], []>} : vector<4x8xbf16>, vector<16x8xbf16>, vector<4x16xf32> -> vector<4x16xf32>
    %87 = arith.addf %57, %86 : vector<4x16xf32>
    %c2 = arith.constant 2 : index
    %c0_59 = arith.constant 0 : index
    %c0_60 = arith.constant 0 : index
    %88 = vector.load %arg12[%c2, %c0_59, %c0_60] : memref<4x32x8xbf16, #tpu.memory_space<vmem>>, vector<1x32x8xbf16>
    %89 = vector.shape_cast %88 : vector<1x32x8xbf16> to vector<32x8xbf16>
    %cst_61 = arith.constant dense<0.000000e+00> : vector<16x8xf32>
    %90 = tpu.matmul %26, %89, %cst_61 {dimension_numbers = #tpu.dot_dimension_numbers<[1], [0], [0], [1], [0, 0, 1, 1], [], []>} : vector<16x32xbf16>, vector<32x8xbf16>, vector<16x8xf32> -> vector<16x8xf32>
    %c2_62 = arith.constant 2 : index
    %c0_63 = arith.constant 0 : index
    %c0_64 = arith.constant 0 : index
    %91 = vector.load %arg13[%c2_62, %c0_63, %c0_64] : memref<4x1x8xf32, #tpu.memory_space<vmem>>, vector<1x1x8xf32>
    %92 = vector.shape_cast %91 : vector<1x1x8xf32> to vector<1x8xf32>
    %93 = vector.broadcast %92 : vector<1x8xf32> to vector<16x8xf32>
    %94 = arith.addf %90, %93 : vector<16x8xf32>
    %95 = arith.truncf %94 : vector<16x8xf32> to vector<16x8xbf16>
    %c2_65 = arith.constant 2 : index
    %c0_66 = arith.constant 0 : index
    %c0_67 = arith.constant 0 : index
    %96 = vector.load %arg21[%c2_65, %c0_66, %c0_67] : memref<4x8x8xbf16, #tpu.memory_space<vmem>>, vector<1x8x8xbf16>
    %97 = vector.shape_cast %96 : vector<1x8x8xbf16> to vector<8x8xbf16>
    %cst_68 = arith.constant dense<0.000000e+00> : vector<16x8xf32>
    %98 = tpu.matmul %95, %97, %cst_68 {dimension_numbers = #tpu.dot_dimension_numbers<[1], [1], [0], [0], [0, 0, 1, 0], [], []>} : vector<16x8xbf16>, vector<8x8xbf16>, vector<16x8xf32> -> vector<16x8xf32>
    %cst_69 = arith.constant dense<0xFF800000> : vector<16xf32>
    %99 = vector.multi_reduction <maximumf>, %98, %cst_69 [1] : vector<16x8xf32> to vector<16xf32>
    %100 = vector.shape_cast %99 : vector<16xf32> to vector<16x1xf32>
    %101 = vector.broadcast %100 : vector<16x1xf32> to vector<16x8xf32>
    %102 = arith.subf %98, %101 : vector<16x8xf32>
    %103 = math.exp %102 : vector<16x8xf32>
    %cst_70 = arith.constant dense<0.000000e+00> : vector<16xf32>
    %104 = vector.multi_reduction <add>, %103, %cst_70 [1] : vector<16x8xf32> to vector<16xf32>
    %105 = vector.shape_cast %104 : vector<16xf32> to vector<16x1xf32>
    %106 = tpu.reciprocal %105 {approx = true} : vector<16x1xf32> -> vector<16x1xf32>
    %107 = vector.broadcast %106 : vector<16x1xf32> to vector<16x8xf32>
    %108 = arith.mulf %103, %107 : vector<16x8xf32>
    %109 = arith.truncf %108 : vector<16x8xf32> to vector<16x8xbf16>
    %c2_71 = arith.constant 2 : index
    %c0_72 = arith.constant 0 : index
    %c0_73 = arith.constant 0 : index
    %110 = vector.load %arg22[%c2_71, %c0_72, %c0_73] : memref<4x8x8xbf16, #tpu.memory_space<vmem>>, vector<1x8x8xbf16>
    %111 = vector.shape_cast %110 : vector<1x8x8xbf16> to vector<8x8xbf16>
    %cst_74 = arith.constant dense<0.000000e+00> : vector<16x8xf32>
    %112 = tpu.matmul %109, %111, %cst_74 {dimension_numbers = #tpu.dot_dimension_numbers<[1], [0], [0], [1], [0, 0, 1, 1], [], []>} : vector<16x8xbf16>, vector<8x8xbf16>, vector<16x8xf32> -> vector<16x8xf32>
    %c2_75 = arith.constant 2 : index
    %c0_76 = arith.constant 0 : index
    %c0_77 = arith.constant 0 : index
    %113 = vector.load %arg18[%c2_75, %c0_76, %c0_77] : memref<4x4x8xbf16, #tpu.memory_space<vmem>>, vector<1x4x8xbf16>
    %114 = vector.shape_cast %113 : vector<1x4x8xbf16> to vector<4x8xbf16>
    %115 = arith.truncf %112 : vector<16x8xf32> to vector<16x8xbf16>
    %cst_78 = arith.constant dense<0.000000e+00> : vector<4x16xf32>
    %116 = tpu.matmul %114, %115, %cst_78 {dimension_numbers = #tpu.dot_dimension_numbers<[1], [1], [0], [0], [0, 0, 1, 0], [], []>} : vector<4x8xbf16>, vector<16x8xbf16>, vector<4x16xf32> -> vector<4x16xf32>
    %117 = arith.addf %87, %116 : vector<4x16xf32>
    %c3 = arith.constant 3 : index
    %c0_79 = arith.constant 0 : index
    %c0_80 = arith.constant 0 : index
    %118 = vector.load %arg12[%c3, %c0_79, %c0_80] : memref<4x32x8xbf16, #tpu.memory_space<vmem>>, vector<1x32x8xbf16>
    %119 = vector.shape_cast %118 : vector<1x32x8xbf16> to vector<32x8xbf16>
    %cst_81 = arith.constant dense<0.000000e+00> : vector<16x8xf32>
    %120 = tpu.matmul %26, %119, %cst_81 {dimension_numbers = #tpu.dot_dimension_numbers<[1], [0], [0], [1], [0, 0, 1, 1], [], []>} : vector<16x32xbf16>, vector<32x8xbf16>, vector<16x8xf32> -> vector<16x8xf32>
    %c3_82 = arith.constant 3 : index
    %c0_83 = arith.constant 0 : index
    %c0_84 = arith.constant 0 : index
    %121 = vector.load %arg13[%c3_82, %c0_83, %c0_84] : memref<4x1x8xf32, #tpu.memory_space<vmem>>, vector<1x1x8xf32>
    %122 = vector.shape_cast %121 : vector<1x1x8xf32> to vector<1x8xf32>
    %123 = vector.broadcast %122 : vector<1x8xf32> to vector<16x8xf32>
    %124 = arith.addf %120, %123 : vector<16x8xf32>
    %125 = arith.truncf %124 : vector<16x8xf32> to vector<16x8xbf16>
    %c3_85 = arith.constant 3 : index
    %c0_86 = arith.constant 0 : index
    %c0_87 = arith.constant 0 : index
    %126 = vector.load %arg21[%c3_85, %c0_86, %c0_87] : memref<4x8x8xbf16, #tpu.memory_space<vmem>>, vector<1x8x8xbf16>
    %127 = vector.shape_cast %126 : vector<1x8x8xbf16> to vector<8x8xbf16>
    %cst_88 = arith.constant dense<0.000000e+00> : vector<16x8xf32>
    %128 = tpu.matmul %125, %127, %cst_88 {dimension_numbers = #tpu.dot_dimension_numbers<[1], [1], [0], [0], [0, 0, 1, 0], [], []>} : vector<16x8xbf16>, vector<8x8xbf16>, vector<16x8xf32> -> vector<16x8xf32>
    %cst_89 = arith.constant dense<0xFF800000> : vector<16xf32>
    %129 = vector.multi_reduction <maximumf>, %128, %cst_89 [1] : vector<16x8xf32> to vector<16xf32>
    %130 = vector.shape_cast %129 : vector<16xf32> to vector<16x1xf32>
    %131 = vector.broadcast %130 : vector<16x1xf32> to vector<16x8xf32>
    %132 = arith.subf %128, %131 : vector<16x8xf32>
    %133 = math.exp %132 : vector<16x8xf32>
    %cst_90 = arith.constant dense<0.000000e+00> : vector<16xf32>
    %134 = vector.multi_reduction <add>, %133, %cst_90 [1] : vector<16x8xf32> to vector<16xf32>
    %135 = vector.shape_cast %134 : vector<16xf32> to vector<16x1xf32>
    %136 = tpu.reciprocal %135 {approx = true} : vector<16x1xf32> -> vector<16x1xf32>
    %137 = vector.broadcast %136 : vector<16x1xf32> to vector<16x8xf32>
    %138 = arith.mulf %133, %137 : vector<16x8xf32>
    %139 = arith.truncf %138 : vector<16x8xf32> to vector<16x8xbf16>
    %c3_91 = arith.constant 3 : index
    %c0_92 = arith.constant 0 : index
    %c0_93 = arith.constant 0 : index
    %140 = vector.load %arg22[%c3_91, %c0_92, %c0_93] : memref<4x8x8xbf16, #tpu.memory_space<vmem>>, vector<1x8x8xbf16>
    %141 = vector.shape_cast %140 : vector<1x8x8xbf16> to vector<8x8xbf16>
    %cst_94 = arith.constant dense<0.000000e+00> : vector<16x8xf32>
    %142 = tpu.matmul %139, %141, %cst_94 {dimension_numbers = #tpu.dot_dimension_numbers<[1], [0], [0], [1], [0, 0, 1, 1], [], []>} : vector<16x8xbf16>, vector<8x8xbf16>, vector<16x8xf32> -> vector<16x8xf32>
    %c3_95 = arith.constant 3 : index
    %c0_96 = arith.constant 0 : index
    %c0_97 = arith.constant 0 : index
    %143 = vector.load %arg18[%c3_95, %c0_96, %c0_97] : memref<4x4x8xbf16, #tpu.memory_space<vmem>>, vector<1x4x8xbf16>
    %144 = vector.shape_cast %143 : vector<1x4x8xbf16> to vector<4x8xbf16>
    %145 = arith.truncf %142 : vector<16x8xf32> to vector<16x8xbf16>
    %cst_98 = arith.constant dense<0.000000e+00> : vector<4x16xf32>
    %146 = tpu.matmul %144, %145, %cst_98 {dimension_numbers = #tpu.dot_dimension_numbers<[1], [1], [0], [0], [0, 0, 1, 0], [], []>} : vector<4x8xbf16>, vector<16x8xbf16>, vector<4x16xf32> -> vector<4x16xf32>
    %147 = arith.addf %117, %146 : vector<4x16xf32>
    %c0_99 = arith.constant 0 : index
    %c0_100 = arith.constant 0 : index
    %148 = vector.load %arg19[%c0_99, %c0_100] : memref<4x1xf32, #tpu.memory_space<vmem>>, vector<4x1xf32>
    %149 = vector.broadcast %148 : vector<4x1xf32> to vector<4x16xf32>
    %150 = arith.addf %147, %149 : vector<4x16xf32>
    %c0_101 = arith.constant 0 : index
    %c0_102 = arith.constant 0 : index
    %c0_103 = arith.constant 0 : index
    %151 = vector.load %arg20[%c0_101, %c0_102, %c0_103] : memref<1x4x16xf32, #tpu.memory_space<vmem>>, vector<1x4x16xf32>
    %152 = vector.shape_cast %151 : vector<1x4x16xf32> to vector<4x16xf32>
    %153 = vector.shape_cast %150 : vector<4x16xf32> to vector<1x4x16xf32>
    tpu.vector_store %arg20[%c0_101, %c0_102, %c0_103], %153 {strides = array<i32>} : memref<1x4x16xf32, #tpu.memory_space<vmem>>, vector<1x4x16xf32>,
    return
  }
  func.func @transform_0(%arg0: i32, %arg1: i32) -> (i32, i32, i32) {
    %c0_i32 = arith.constant 0 : i32
    %c0_i32_0 = arith.constant 0 : i32
    %c0_i32_1 = arith.constant 0 : i32
    return %arg0, %c0_i32, %c0_i32_0 : i32, i32, i32
  }
  func.func @transform_1(%arg0: i32, %arg1: i32) -> (i32, i32, i32) {
    %c0_i32 = arith.constant 0 : i32
    %c0_i32_0 = arith.constant 0 : i32
    return %arg0, %arg1, %c0_i32 : i32, i32, i32
  }
  func.func @transform_2(%arg0: i32, %arg1: i32) -> (i32, i32) {
    %c0_i32 = arith.constant 0 : i32
    %c0_i32_0 = arith.constant 0 : i32
    return %arg1, %c0_i32 : i32, i32
  }
  func.func @transform_3(%arg0: i32, %arg1: i32) -> (i32, i32) {
    %c0_i32 = arith.constant 0 : i32
    %c0_i32_0 = arith.constant 0 : i32
    %c0_i32_1 = arith.constant 0 : i32
    return %c0_i32, %c0_i32_0 : i32, i32
  }
  func.func @transform_4(%arg0: i32, %arg1: i32) -> (i32, i32) {
    %c0_i32 = arith.constant 0 : i32
    %c0_i32_0 = arith.constant 0 : i32
    %c0_i32_1 = arith.constant 0 : i32
    return %c0_i32, %c0_i32_0 : i32, i32
  }
  func.func @transform_5(%arg0: i32, %arg1: i32) -> (i32, i32) {
    %c0_i32 = arith.constant 0 : i32
    %c0_i32_0 = arith.constant 0 : i32
    %c0_i32_1 = arith.constant 0 : i32
    return %c0_i32, %c0_i32_0 : i32, i32
  }
  func.func @transform_6(%arg0: i32, %arg1: i32) -> (i32, i32) {
    %c0_i32 = arith.constant 0 : i32
    %c0_i32_0 = arith.constant 0 : i32
    %c0_i32_1 = arith.constant 0 : i32
    return %c0_i32, %c0_i32_0 : i32, i32
  }
  func.func @transform_7(%arg0: i32, %arg1: i32) -> (i32, i32) {
    %c0_i32 = arith.constant 0 : i32
    %c0_i32_0 = arith.constant 0 : i32
    %c0_i32_1 = arith.constant 0 : i32
    return %c0_i32, %c0_i32_0 : i32, i32
  }
  func.func @transform_8(%arg0: i32, %arg1: i32) -> (i32, i32) {
    %c0_i32 = arith.constant 0 : i32
    %c0_i32_0 = arith.constant 0 : i32
    %c0_i32_1 = arith.constant 0 : i32
    return %c0_i32, %c0_i32_0 : i32, i32
  }
  func.func @transform_9(%arg0: i32, %arg1: i32) -> (i32, i32) {
    %c0_i32 = arith.constant 0 : i32
    %c0_i32_0 = arith.constant 0 : i32
    %c0_i32_1 = arith.constant 0 : i32
    return %c0_i32, %c0_i32_0 : i32, i32
  }
  func.func @transform_10(%arg0: i32, %arg1: i32) -> (i32, i32, i32) {
    %c0_i32 = arith.constant 0 : i32
    %c0_i32_0 = arith.constant 0 : i32
    %c0_i32_1 = arith.constant 0 : i32
    %c0_i32_2 = arith.constant 0 : i32
    return %c0_i32, %c0_i32_0, %c0_i32_1 : i32, i32, i32
  }
  func.func @transform_11(%arg0: i32, %arg1: i32) -> (i32, i32, i32) {
    %c0_i32 = arith.constant 0 : i32
    %c0_i32_0 = arith.constant 0 : i32
    %c0_i32_1 = arith.constant 0 : i32
    %c0_i32_2 = arith.constant 0 : i32
    return %c0_i32, %c0_i32_0, %c0_i32_1 : i32, i32, i32
  }
  func.func @transform_12(%arg0: i32, %arg1: i32) -> (i32, i32, i32) {
    %c0_i32 = arith.constant 0 : i32
    %c0_i32_0 = arith.constant 0 : i32
    %c0_i32_1 = arith.constant 0 : i32
    %c0_i32_2 = arith.constant 0 : i32
    return %c0_i32, %c0_i32_0, %c0_i32_1 : i32, i32, i32
  }
  func.func @transform_13(%arg0: i32, %arg1: i32) -> (i32, i32, i32) {
    %c0_i32 = arith.constant 0 : i32
    %c0_i32_0 = arith.constant 0 : i32
    %c0_i32_1 = arith.constant 0 : i32
    %c0_i32_2 = arith.constant 0 : i32
    return %c0_i32, %c0_i32_0, %c0_i32_1 : i32, i32, i32
  }
  func.func @transform_14(%arg0: i32, %arg1: i32) -> (i32, i32, i32) {
    %c0_i32 = arith.constant 0 : i32
    %c0_i32_0 = arith.constant 0 : i32
    %c0_i32_1 = arith.constant 0 : i32
    %c0_i32_2 = arith.constant 0 : i32
    return %c0_i32, %c0_i32_0, %c0_i32_1 : i32, i32, i32
  }
  func.func @transform_15(%arg0: i32, %arg1: i32) -> (i32, i32, i32) {
    %c0_i32 = arith.constant 0 : i32
    %c0_i32_0 = arith.constant 0 : i32
    %c0_i32_1 = arith.constant 0 : i32
    %c0_i32_2 = arith.constant 0 : i32
    return %c0_i32, %c0_i32_0, %c0_i32_1 : i32, i32, i32
  }
  func.func @transform_16(%arg0: i32, %arg1: i32) -> (i32, i32, i32) {
    %c0_i32 = arith.constant 0 : i32
    %c0_i32_0 = arith.constant 0 : i32
    %c0_i32_1 = arith.constant 0 : i32
    %c0_i32_2 = arith.constant 0 : i32
    return %c0_i32, %c0_i32_0, %c0_i32_1 : i32, i32, i32
  }
  func.func @transform_17(%arg0: i32, %arg1: i32) -> (i32, i32) {
    %c0_i32 = arith.constant 0 : i32
    %c0_i32_0 = arith.constant 0 : i32
    %c0_i32_1 = arith.constant 0 : i32
    return %c0_i32, %c0_i32_0 : i32, i32
  }
  func.func @transform_18(%arg0: i32, %arg1: i32) -> (i32, i32, i32) {
    %c0_i32 = arith.constant 0 : i32
    %c0_i32_0 = arith.constant 0 : i32
    return %arg0, %c0_i32, %arg1 : i32, i32, i32
  }
}

</mosaic_0001>

<bundles_post_ra>
// kernel: tpu_custom_call.1
= control target key start
LH: loop header
LB: loop body
LE: loop exit
PB: predicated region body
PF: predicated region fallthrough
CT: control target
= control target key end

     0   :  { %s3610_s0 = inlined_call_operand.vmem [shape: bf16[2,8,4], index: 0, kind: input, shape index: {}]   ;;  %s3611_s1 = inlined_call_operand.vmem [shape: bf16[2,16,4], index: 1, kind: input, shape index: {}]   ;;  %s3612_s2 = inlined_call_operand.vmem [shape: f32[16,32], index: 2, kind: input, shape index: {}]   ;;  %s3613_s3 = inlined_call_operand.vmem [shape: f32[1,32], index: 3, kind: input, shape index: {}]   ;;  %s3614_s4 = inlined_call_operand.vmem [shape: bf16[4,64], index: 4, kind: input, shape index: {}]   ;;  %s3615_s5 = inlined_call_operand.vmem [shape: f32[1,64], index: 5, kind: input, shape index: {}]   ;;  %s3616_s6 = inlined_call_operand.vmem [shape: bf16[32,32], index: 6, kind: input, shape index: {}]   ;;  %s3617_s7 = inlined_call_operand.vmem [shape: f32[1,32], index: 7, kind: input, shape index: {}]   ;;  %s3618_s8 = inlined_call_operand.vmem [shape: bf16[4,32], index: 8, kind: input, shape index: {}]   ;;  %s3619_s9 = inlined_call_operand.vmem [shape: f32[1,32], index: 9, kind: input, shape index: {}]   ;;  %s3620_s10 = inlined_call_operand.vmem [shape: bf16[4,32,8], index: 10, kind: input, shape index: {}]   ;;  %s3621_s11 = inlined_call_operand.vmem [shape: f32[4,1,8], index: 11, kind: input, shape index: {}]   ;;  %s3622_s12 = inlined_call_operand.vmem [shape: bf16[4,32,8], index: 12, kind: input, shape index: {}]   ;;  %s3623_s13 = inlined_call_operand.vmem [shape: f32[4,1,8], index: 13, kind: input, shape index: {}]   ;;  %s3624_s14 = inlined_call_operand.vmem [shape: bf16[4,32,8], index: 14, kind: input, shape index: {}]   ;;  %s3625_s15 = inlined_call_operand.vmem [shape: f32[4,1,8], index: 15, kind: input, shape index: {}]   ;;  %s3626_s16 = inlined_call_operand.vmem [shape: bf16[4,4,8], index: 16, kind: input, shape index: {}]   ;;  %s3627_s17 = inlined_call_operand.vmem [shape: f32[4,1], index: 17, kind: input, shape index: {}]   ;;  %s3628_s18 = inlined_call_operand.hbm [shape: f32[2,4,16], index: 18, kind: output, shape index: {}]  }
   0x1   :  { %3637 = sst [smem:[#allocation14_spill]] %s3610_s0 }
   0x2   :  { %3638 = sst [smem:[#allocation15_spill]] %s3611_s1 }
   0x3   :  { %3639 = sst [smem:[#allocation16_spill]] %s3612_s2 }
   0x4   :  { %3640 = sst [smem:[#allocation17_spill]] %s3618_s8 }
   0x5   :  { %23 = vsyncpa [#allocation5], 0 }
   0x6   :  { %25 = vsyncpa [#allocation5 + $0x1], 0  ;;  %s3171_s27 = smov 0   ;;  %s3173_s28 = smov 0  }
   0x7   :  { %s3175_s29 = smov 0   ;;  %s3177_s30 = smov 0  }
   0x8   :  { %s3179_s0 = smov 0   ;;  %s3181_s19 = smov 0  }
   0x9 LB: > { %3641 = sst [smem:[#allocation7_spill]] %s3049_s27  ;;  %s2483_s1 = sadd.s32 4294967295, %s3069_s19   ;;  %s3069_s19 = sphi %s3181_s19, %s31_s19   ;;  %s3065_s0 = sphi %s3179_s0, %s3660_s0   ;;  %s3061_s30 = sphi %s3177_s30, %s3659_s30   ;;  %s3057_s29 = sphi %s3175_s29, %s3658_s29   ;;  %s3053_s28 = sphi %s3173_s28, %s3662_s28   ;;  %s3049_s27 = sphi %s3171_s27, %s3661_s27  }
   0xa   : > { %3642 = sst [smem:[#allocation8_spill]] %s3057_s29  ;;  %s2484_s20 = sadd.s32 4294967294, %s3069_s19  }
   0xb   : > { %3643 = sst [smem:[#allocation9_spill]] %s3065_s0  ;;  %s43_s21 = sadd.s32 1, %s3065_s0 }
   0xc   : > { %3644 = sst [smem:[#allocation10_spill]] %s3069_s19  ;;  %s447_s22 = sadd.s32 1, %s3057_s29 }
   0xd   : > { %p45_p0 = scmp.ge.s32.totalorder %s43_s21, 2  ;;  %p457_p1 = scmp.ne.s32.totalorder %s3057_s29, %s3053_s28 }
   0xe   : > { %p458_p2 = scmp.eq.s32.totalorder %s2483_s1, 1  ;;  %p463_p3 = scmp.ne.s32.totalorder %s3053_s28, %s3049_s27 }
   0xf   : > { %s3664_s21 = smov (%p45_p0, %s43_s21), 0  ;;  %p464_p5 = scmp.eq.s32.totalorder %s2484_s20, 1 }
  0x10   : > { %3645 = sst [smem:[#allocation11_spill]] %s3664_s21  ;;  %p3211_p4 = por %p458_p2, %p457_p1 }
  0x11   : > { %s442_s23 = ssub.s32 %s3065_s0, %s3664_s21  ;;  %p2488_p6 = scmp.ge.s32.totalorder %s3069_s19, 1 }
  0x12   : > { %p445_p7 = scmp.eq.s32.totalorder %s442_s23, 0  ;;  %p3218_p8 = por %p464_p5, %p463_p3 }
  0x13   : > { %p556_p9 = scmp.lt.s32.totalorder %s3069_s19, 3 }
  0x14   : > { %s3647_s24 = scalar_select %p3218_p8, 1, 0 }
  0x15   : > { %s3224_s25 = scalar_select %p445_p7, %s3057_s29, %s447_s22  }
  0x16   : > { %3648 = sst [smem:[#allocation12_spill]] %s3647_s24  ;;  %p557_p10 = pnand %p2488_p6, %p556_p9 }
  0x17   : > { %3649 = sst [smem:[#allocation13_spill]] %s3224_s25  ;;  %s3650_s8 = sld [smem:[#allocation17_spill]] (!%p557_p10)  ;;  %vm661_vm0 = vcmask (!%p557_p10), 1041408   ;;  %v3071_v1 = vmov (!%p557_p10), 0.0   ;;  %v2933_v3 = vld [vmem:[%s3622_s12] sm:$0xff] (!%p557_p10)   ;;  %vm3072_vm1 = vmmov (!%p557_p10), 0  }
  0x18   : > { %560 = sbr.rel (%p557_p10) target bundleno = 4216 (0x1078), region = 92  ;;  %2683 = vmatprep.subr.bf16.mxu0 (!%p557_p10), %v3071_v1  ;;  %p623_p11 = scmp.lt.s32.totalorder (!%p557_p10), %s3061_s30, 1  ;;  %2689 = vmatprep.subr.bf16.mxu1 (!%p557_p10), %v3071_v1  ;;  %vm657_vm2 = vcmask (!%p557_p10), 31744   ;;  %v2934_v4 = vld [vmem:[%s3624_s14] sm:$0xff] (!%p557_p10)   ;;  %v2935_v6 = vld [vmem:[%s3622_s12 + $0x8] sm:$0xff] (!%p557_p10)   ;;  %vm729_vm3 = vcmask (!%p557_p10), 261120  }
  0x19   : > { %2685 = vmatprep.mubr.msk.bf16.mxu0 (!%p557_p10), %vm3072_vm1, %v3071_v1  ;;  %2690 = vmatpush3.bf16.msra.mxu1 (!%p557_p10), %v2933_v3  ;;  %s3651_s0 = sld [smem:[#allocation14_spill]] (!%p557_p10)  ;;  %s3652_s27 = sld [smem:[#allocation15_spill]] (!%p557_p10)  ;;  %v2936_v7 = vld [vmem:[%s3624_s14 + $0x8] sm:$0xff] (!%p557_p10)   ;;  %v2493_v8 = vld [vmem:[%s3619_s9] ss:$0 sm:$0xff] (!%p557_p10)  ;;  %v2937_v13 = vld [vmem:[%s3622_s12 + $0x10] sm:$0xff] (!%p557_p10)  }
  0x1a   : > { %2691 = vmatprep.subr.bf16.mxu1 (!%p557_p10), %v3071_v1  ;;  %2693 = vmatprep.mubr.msk.bf16.mxu1 (!%p557_p10), %vm3072_vm1, %v3071_v1  ;;  %v2938_v14 = vld [vmem:[%s3624_s14 + $0x10] sm:$0xff] (!%p557_p10)   ;;  %v2939_v17 = vld [vmem:[%s3622_s12 + $0x18] sm:$0xff] (!%p557_p10)   ;;  %v2941_v19 = vld [vmem:[%s3622_s12 + $0x20] sm:$0xff] (!%p557_p10)   ;;  %vm774_vm4 = vcmask (!%p557_p10), 60416   ;;  %vm1477_vm5 = vcmask (!%p557_p10), 64512   ;;  %s3653_s26 = sld [smem:[#allocation16_spill]] (!%p557_p10) }
  0x1b   : > { %v2940_v18 = vld [vmem:[%s3624_s14 + $0x18] sm:$0xff] (!%p557_p10)   ;;  %v2942_v20 = vld [vmem:[%s3624_s14 + $0x20] sm:$0xff] (!%p557_p10)   ;;  %v2943_v21 = vld [vmem:[%s3622_s12 + $0x28] sm:$0xff] (!%p557_p10)   ;;  %vm1552_vm6 = vcmask (!%p557_p10), 1043456   ;;  %vm2365_vm7 = vcmask (!%p557_p10), 125952  }
  0x1c   : > { %v2944_v22 = vld [vmem:[%s3624_s14 + $0x28] sm:$0xff] (!%p557_p10)   ;;  %v2945_v23 = vld [vmem:[%s3622_s12 + $0x30] sm:$0xff] (!%p557_p10)   ;;  %v2947_v25 = vld [vmem:[%s3622_s12 + $0x38] sm:$0xff] (!%p557_p10)  }
  0x1d   : > { %v649_v0 = vld [vmem:[%s3650_s8] sm:$0x3] (!%p557_p10)  ;;  %2692 = vmatpush3.bf16.msra.mxu1 (!%p557_p10), %v2935_v6  ;;  %v2946_v24 = vld [vmem:[%s3624_s14 + $0x30] sm:$0xff] (!%p557_p10)   ;;  %v2948_v26 = vld [vmem:[%s3624_s14 + $0x38] sm:$0xff] (!%p557_p10)  }
  0x1e   : > { %v663_v2 = vsel (!%p557_p10), %vm661_vm0, %v649_v0, 0  ;;  %2705 = vmatprep.subr.bf16.mxu1 (!%p557_p10), %v3071_v1  ;;  %v1251_v27 = vld [vmem:[%s3614_s4] sm:$0x3] (!%p557_p10)  ;;  %v2950_v31 = vld [vmem:[%s3616_s6 + $0x8] sm:$0xff] (!%p557_p10)   ;;  %v2526_v60 = vld [vmem:[%s3623_s13 + $0x2] ss:$0 sm:$0xff] (!%p557_p10) }
  0x1f   : > { %2684 = vmatpush3.bf16.msra.mxu0 %v663_v2  ;;  %s624_s23 = scalar_select %p623_p11, %s3061_s30, 1  ;;  %v1270_v28 = vsel %vm661_vm0, %v1251_v27, 0  ;;  %v2949_v30 = vld [vmem:[%s3616_s6] sm:$0xff]  }
  0x20   : > { %2697 = vmatprep.subr.bf16.mxu0 %v3071_v1  ;;  %v2495_v32 = vld [vmem:[%s3623_s13] ss:$0 sm:$0xff]  ;;  %v2508_v46 = vld [vmem:[%s3623_s13 + $0x1] ss:$0 sm:$0xff]  ;;  %v2535_v61 = vld [vmem:[%s3625_s15 + $0x2] ss:$0 sm:$0xff] }
  0x21   : > { %s2490_s20 = sshll.u32 %s624_s23, 2  ;;  %s2615_s22 = sshll.u32 %s624_s23, 3  ;;  %v2499_v33 = vld [vmem:[%s3625_s15] ss:$0 sm:$0xff]  ;;  %v2517_v47 = vld [vmem:[%s3625_s15 + $0x1] ss:$0 sm:$0xff] }
  0x22   : > { %s626_s25 = scalar_lea.vmem %s3651_s0, %s2490_s20  ;;  %s3252_s19 = scalar_lea.vmem %s3652_s27, %s2615_s22 }
  0x23   : > { %v648_v5 = vld [vmem:[%s626_s25] sm:$0xf]  ;;  %s3073_s27 = smov 96   ;;  %s620_s22 = sand.u32 1, %s3053_s28  }
  0x24   : > { %2686 = vmatmul.mubr.msk.bf16.vlgmr.msra.gmra.mrb[0].mxu0 %vm657_vm2, %v648_v5  ;;  %v2932_v29 = vld [vmem:[%s3252_s19] sm:$0xff]   ;;  %s2489_s19 = sshll.u32 %s620_s22, 2  ;;  %s2612_s23 = sshll.u32 %s3061_s30, 6 }
  0x25   : > { %2698 = vmatpush3.bf16.msra.mxu0 %v2934_v4  ;;  %2701 = vmatprep.mubr.msk.bf16.mxu0 %vm3072_vm1, %v3071_v1  ;;  %s622_s8 = scalar_lea.vmem [#allocation4], %s2489_s19  ;;  %s3563_s21 = scalar_lea.hbm %s3628_s18, %s2612_s23 }
  0x26   : > { %2699 = vmatprep.subr.bf16.mxu0 %v3071_v1  ;;  %s2382_s0 = sshll.u32 %s622_s8, 4  ;;  %s2368_s30 = scalar_lea.sflag [#allocation5], %s620_s22  ;;  %s3565_s0 = int_to_ptr.vmem [resolvable:$true] %s2382_s0 }
  0x27   : > { %s2991_s24 = scalar_lea.vmem %s3565_s0, 64  ;;  %s3075_s25 = smov [#allocation4]  }
  0x28   : > { %p2992_p12 = scmp.ne.s32.totalorder %s3565_s0, %s2991_s24  ;;  %s2995_s1 = sshll.u32 %s3075_s25, 4  ;;  %s2996_s1 = int_to_ptr.vmem [resolvable:$false] %s2995_s1 }
  0x29   : > { %2700 = vmatpush3.bf16.msra.mxu0 %v2936_v7  ;;  %s2997_s20 = scalar_lea.vmem %s2996_s1, 128  ;;  %p2998_p1 = scmp.lt.s32.totalorder %s3565_s0, %s2996_s1 }
  0x2a   : > { %2713 = vmatprep.subr.bf16.mxu0 %v3071_v1  ;;  %p2993_p13 = pnand %p2992_p12, %p3211_p4  ;;  %p2999_p2 = scmp.lt.s32.totalorder %s2997_s20, %s2991_s24 }
  0x2c   : > { %p2994_p0 = pneg %p2993_p13  ;;  %p3000_p3 = por %p2999_p2, %p2998_p1 }
  0x2e   : > { %p3001_p5 = pnand %p3000_p3, %p2994_p0 }
  0xf7   : > { %v699_v9 = vpop.f32.mrb[0].mxu0 }
  0xf8   : > { %v700_v10 = vadd.f32 %v2493_v8, %v699_v9  ;;  %v2687_v11 = vpop.f32.mrb[1].mxu0 }
  0xf9   : > { %v702_v12 = vpop.f32.mrb[2].mxu0  ;;  %v2544_v11 = vld [vmem:[%s3623_s13 + $0x3] ss:$0 sm:$0xff] }
  0xfa   : > { %v705_v15 = vpack.c.bf16 %v700_v10, %v700_v10  ;;  %v2688_v16 = vpop.f32.mrb[3].mxu0  ;;  %v2553_v12 = vld [vmem:[%s3625_s15 + $0x3] ss:$0 sm:$0xff] }
  0xfc   : > { %2694 = vmatmul.mubr.msk.bf16.vlgmr.msra.gmra.mrb[0].mxu1 %vm729_vm3, %v705_v15  ;;  %2702 = vmatmul.mubr.msk.bf16.vlgmr.msra.gmra.mrb[4].mxu0 %vm729_vm3, %v705_v15 }
  0xfd   : > { %2706 = vmatpush3.bf16.msra.mxu1 %v2937_v13  ;;  %2714 = vmatpush3.bf16.msra.mxu0 %v2938_v14 }
  0xfe   : > { %2707 = vmatprep.subr.bf16.mxu1 %v3071_v1  ;;  %2715 = vmatprep.subr.bf16.mxu0 %v3071_v1 }
  0xff   : > { %2709 = vmatprep.mubr.msk.bf16.mxu1 %vm3072_vm1, %v3071_v1  ;;  %2717 = vmatprep.mubr.msk.bf16.mxu0 %vm3072_vm1, %v3071_v1 }
 0x101   : > { %2708 = vmatpush3.bf16.msra.mxu1 %v2939_v17  ;;  %2716 = vmatpush3.bf16.msra.mxu0 %v2940_v18 }
 0x102   : > { %2721 = vmatprep.subr.bf16.mxu1 %v3071_v1  ;;  %2729 = vmatprep.subr.bf16.mxu0 %v3071_v1 }
 0x104   : > { %2710 = vmatmul.mubr.msk.bf16.vlgmr.msra.gmra.mrb[4].mxu1 %vm729_vm3, %v705_v15  ;;  %2718 = vmatmul.mubr.msk.bf16.vlgmr.msra.gmra.mrb[8].mxu0 %vm729_vm3, %v705_v15 }
 0x105   : > { %2722 = vmatpush3.bf16.msra.mxu1 %v2941_v19  ;;  %2730 = vmatpush3.bf16.msra.mxu0 %v2942_v20 }
 0x106   : > { %2723 = vmatprep.subr.bf16.mxu1 %v3071_v1  ;;  %2731 = vmatprep.subr.bf16.mxu0 %v3071_v1 }
 0x107   : > { %2725 = vmatprep.mubr.msk.bf16.mxu1 %vm3072_vm1, %v3071_v1  ;;  %2733 = vmatprep.mubr.msk.bf16.mxu0 %vm3072_vm1, %v3071_v1 }
 0x109   : > { %2724 = vmatpush3.bf16.msra.mxu1 %v2943_v21  ;;  %2732 = vmatpush3.bf16.msra.mxu0 %v2944_v22 }
 0x10a   : > { %2737 = vmatprep.subr.bf16.mxu1 %v3071_v1  ;;  %2745 = vmatprep.subr.bf16.mxu0 %v3071_v1 }
 0x10c   : > { %2726 = vmatmul.mubr.msk.bf16.vlgmr.msra.gmra.mrb[8].mxu1 %vm729_vm3, %v705_v15  ;;  %2734 = vmatmul.mubr.msk.bf16.vlgmr.msra.gmra.mrb[12].mxu0 %vm729_vm3, %v705_v15 }
 0x10d   : > { %2738 = vmatpush3.bf16.msra.mxu1 %v2945_v23  ;;  %2746 = vmatpush3.bf16.msra.mxu0 %v2946_v24 }
 0x10e   : > { %2739 = vmatprep.subr.bf16.mxu1 %v3071_v1  ;;  %2747 = vmatprep.subr.bf16.mxu0 %v3071_v1 }
 0x10f   : > { %2741 = vmatprep.mubr.msk.bf16.mxu1 %vm3072_vm1, %v3071_v1  ;;  %2749 = vmatprep.mubr.msk.bf16.mxu0 %vm3072_vm1, %v3071_v1 }
 0x111   : > { %2740 = vmatpush3.bf16.msra.mxu1 %v2947_v25  ;;  %2748 = vmatpush3.bf16.msra.mxu0 %v2948_v26  ;;  %v2557_v25 = vld [vmem:[%s3615_s5] ss:$0 sm:$0xff] }
 0x112   : > { %2753 = vmatprep.subr.bf16.mxu1 %v3071_v1  ;;  %2759 = vmatprep.subr.bf16.mxu0 %v3071_v1 }
 0x114   : > { %2742 = vmatmul.mubr.msk.bf16.vlgmr.msra.gmra.mrb[12].mxu1 %vm729_vm3, %v705_v15  ;;  %2750 = vmatmul.mubr.msk.bf16.vlgmr.msra.gmra.mrb[16].mxu0 %vm729_vm3, %v705_v15 }
 0x115   : > { %2754 = vmatpush3.bf16.msra.mxu1 %v1270_v28  ;;  %2755 = vmatprep.mubr.msk.bf16.mxu1 %vm3072_vm1, %v3071_v1 }
 0x116   : > { %2763 = vmatprep.mubr.msk.bf16.mxu0 %vm3072_vm1, %v3071_v1  ;;  %2767 = vmatprep.subr.bf16.mxu1 %v3071_v1 }
 0x117   : > { %2760 = vmatpush3.bf16.msra.mxu0 %v2949_v30 }
 0x118   : > { %2761 = vmatprep.subr.bf16.mxu0 %v3071_v1 }
 0x11b   : > { %2762 = vmatpush3.bf16.msra.mxu0 %v2950_v31 }
 0x11c   : > { %2756 = vmatmul.mubr.msk.bf16.vlgmr.msra.gmra.mrb[16].mxu1 %vm657_vm2, %v2932_v29  ;;  %2775 = vmatprep.subr.bf16.mxu0 %v3071_v1 }
 0x11d   : > { %2771 = vmatprep.mubr.msk.bf16.mxu1 %vm3072_vm1, %v3071_v1 }
 0x1cf   : > { %v767_v34 = vpop.f32.mrb[0].mxu1  ;;  %v833_v35 = vpop.f32.mrb[4].mxu0 }
 0x1d0   : > { %v768_v36 = vadd.f32 %v2495_v32, %v767_v34  ;;  %v834_v37 = vadd.f32 %v2499_v33, %v833_v35  ;;  %v2695_v38 = vpop.f32.mrb[1].mxu1  ;;  %v2703_v39 = vpop.f32.mrb[5].mxu0 }
 0x1d1   : > { %v770_v40 = vpop.f32.mrb[2].mxu1  ;;  %v836_v41 = vpop.f32.mrb[6].mxu0  ;;  %v2952_v38 = vld [vmem:[%s3620_s10 + $0x8] sm:$0xff]   ;;  %v2560_v39 = vld [vmem:[%s3617_s7] ss:$0 sm:$0xff] }
 0x1d2   : > { %v773_v42 = vpack.c.bf16 %v768_v36, %v768_v36  ;;  %v839_v43 = vpack.c.bf16 %v834_v37, %v834_v37  ;;  %v2696_v44 = vpop.f32.mrb[3].mxu1  ;;  %v2704_v45 = vpop.f32.mrb[7].mxu0  ;;  %v2951_v37 = vld [vmem:[%s3620_s10] sm:$0xff]  }
 0x1d3   : > { %2768 = vmatpush3.bf16.msra.mxu1 %v2951_v37 }
 0x1d4   : > { %775 = vst.msk [vmem:[#allocation2] sm:$0xf] %vm774_vm4, %v773_v42  ;;  %840 = vst.msk [vmem:[#allocation3] sm:$0xf] %vm774_vm4, %v839_v43  ;;  %2769 = vmatprep.subr.bf16.mxu1 %v3071_v1  ;;  %v1384_v42 = vld [vmem:[%s3653_s26] sm:$0xff] }
 0x1d7   : > { %v900_v48 = vpop.f32.mrb[4].mxu1  ;;  %v968_v49 = vpop.f32.mrb[8].mxu0  ;;  %2770 = vmatpush3.bf16.msra.mxu1 %v2952_v38 }
 0x1d8   : > { %v901_v50 = vadd.f32 %v2508_v46, %v900_v48  ;;  %v969_v51 = vadd.f32 %v2517_v47, %v968_v49  ;;  %v2711_v52 = vpop.f32.mrb[5].mxu1  ;;  %v2719_v53 = vpop.f32.mrb[9].mxu0  ;;  %2781 = vmatprep.subr.bf16.mxu1 %v3071_v1  ;;  %v1385_v46 = vld [vmem:[%s3653_s26 + $0x8] sm:$0xff] }
 0x1d9   : > { %v903_v54 = vpop.f32.mrb[6].mxu1  ;;  %v971_v55 = vpop.f32.mrb[10].mxu0  ;;  %v2564_v53 = vld [vmem:[%s3613_s3] ss:$0 sm:$0xff] }
 0x1da   : > { %v906_v56 = vpack.c.bf16 %v901_v50, %v901_v50  ;;  %v974_v57 = vpack.c.bf16 %v969_v51, %v969_v51  ;;  %v2712_v58 = vpop.f32.mrb[7].mxu1  ;;  %v2720_v59 = vpop.f32.mrb[11].mxu0 }
 0x1db   : > { %v1476_v34 = vld [vmem:[#allocation2] sm:$0xf] }
 0x1dc   : > { %908 = vst.msk [vmem:[#allocation2 + $0x4] sm:$0xf] %vm774_vm4, %v906_v56  ;;  %976 = vst.msk [vmem:[#allocation3 + $0x4] sm:$0xf] %vm774_vm4, %v974_v57  ;;  %v1482_v36 = vsel %vm1477_vm5, %v1476_v34, 0 }
 0x1dd   : > { %v1548_v57 = vld [vmem:[#allocation3] sm:$0xf] }
 0x1de   : > { %v1554_v59 = vsel %vm1552_vm6, %v1548_v57, 0 }
 0x1df   : > { %v1036_v62 = vpop.f32.mrb[8].mxu1  ;;  %v1104_v63 = vpop.f32.mrb[12].mxu0 }
 0x1e0   : > { %v1037_v0 = vadd.f32 %v2526_v60, %v1036_v62  ;;  %v1105_v2 = vadd.f32 %v2535_v61, %v1104_v63  ;;  %v2727_v3 = vpop.f32.mrb[9].mxu1  ;;  %v2735_v4 = vpop.f32.mrb[13].mxu0  ;;  %v2565_v60 = vld [vmem:[%s3621_s11] ss:$0 sm:$0xff] }
 0x1e1   : > { %v1039_v5 = vpop.f32.mrb[10].mxu1  ;;  %v1107_v6 = vpop.f32.mrb[14].mxu0  ;;  %v2953_v4 = vld [vmem:[%s3620_s10 + $0x10] sm:$0xff]  }
 0x1e2   : > { %v1042_v7 = vpack.c.bf16 %v1037_v0, %v1037_v0  ;;  %v1110_v8 = vpack.c.bf16 %v1105_v2, %v1105_v2  ;;  %v2728_v9 = vpop.f32.mrb[11].mxu1  ;;  %v2736_v10 = vpop.f32.mrb[15].mxu0  ;;  %v2954_v6 = vld [vmem:[%s3620_s10 + $0x18] sm:$0xff]  }
 0x1e4   : > { %1044 = vst.msk [vmem:[#allocation2 + $0x8] sm:$0xf] %vm774_vm4, %v1042_v7  ;;  %1112 = vst.msk [vmem:[#allocation3 + $0x8] sm:$0xf] %vm774_vm4, %v1110_v8  ;;  %v1739_v7 = vld [vmem:[#allocation3 + $0x4] sm:$0xf] }
 0x1e5   : > { %v1744_v8 = vsel %vm1552_vm6, %v1739_v7, 0 }
 0x1e7   : > { %v1172_v13 = vpop.f32.mrb[12].mxu1  ;;  %v1240_v14 = vpop.f32.mrb[16].mxu0 }
 0x1e8   : > { %v1173_v15 = vadd.f32 %v2544_v11, %v1172_v13  ;;  %v1241_v16 = vadd.f32 %v2553_v12, %v1240_v14  ;;  %v2743_v17 = vpop.f32.mrb[13].mxu1  ;;  %v2751_v18 = vpop.f32.mrb[17].mxu0 }
 0x1e9   : > { %v1175_v19 = vpop.f32.mrb[14].mxu1  ;;  %v1243_v20 = vpop.f32.mrb[18].mxu0 }
 0x1ea   : > { %v1178_v21 = vpack.c.bf16 %v1173_v15, %v1173_v15  ;;  %v1246_v22 = vpack.c.bf16 %v1241_v16, %v1241_v16  ;;  %v2744_v23 = vpop.f32.mrb[15].mxu1  ;;  %v2752_v24 = vpop.f32.mrb[19].mxu0  ;;  %v2576_v15 = vld [vmem:[%s3621_s11 + $0x1] ss:$0 sm:$0xff] }
 0x1ec   : > { %1180 = vst.msk [vmem:[#allocation2 + $0xc] sm:$0xf] %vm774_vm4, %v1178_v21  ;;  %1248 = vst.msk [vmem:[#allocation3 + $0xc] sm:$0xf] %vm774_vm4, %v1246_v22 }
 0x1ef   : > { %v1306_v26 = vpop.f32.mrb[16].mxu1 }
 0x1f0   : > { %v1307_v27 = vadd.f32 %v2557_v25, %v1306_v26  ;;  %v2757_v28 = vpop.f32.mrb[17].mxu1 }
 0x1f1   : > { %v1309_v29 = vpop.f32.mrb[18].mxu1 }
 0x1f2   : > { %v1310_v30 = vadd.f32 %v2557_v25, %v1309_v29  ;;  %1390 = vrot.lane.b32.xlu0 %v1307_v27, %s3073_s27  ;;  %v2758_v31 = vpop.f32.mrb[19].mxu1  ;;  %v1313_v32 = vmax.f32 %v1307_v27, 0.0 }
 0x1f4   : > { %v1314_v33 = vmax.f32 %v1310_v30, 0.0 }
 0x1f6   : > { %v1315_v35 = vpack.c.bf16 %v1314_v33, %v1313_v32  ;;  %1392 = vrot.lane.b32.xlu0 %v1310_v30, %s3073_s27 }
 0x1f8   : > { %2764 = vmatmul.mubr.msk.bf16.vlgmr.msra.gmra.mrb[20].mxu0 %vm729_vm3, %v1315_v35 }
 0x1f9   : > { %2776 = vmatpush3.bf16.xpose.msra.mxu0 %v1482_v36  ;;  %2777 = vmatprep.mubr.msk.bf16.mxu0 %vm3072_vm1, %v3071_v1 }
 0x1fa   : > { %2787 = vmatprep.subr.bf16.mxu0 %v3071_v1 }
 0x264   : > { %v1391_v40 = vpop.permute.xlu0 %1390 }
 0x268   : > { %v1393_v52 = vpop.permute.xlu0 %1392 }
 0x2cb   : > { %v1377_v41 = vpop.f32.mrb[20].mxu0 }
 0x2cc   : > { %v1378_v43 = vadd.f32 %v2560_v39, %v1377_v41  ;;  %v2765_v44 = vpop.f32.mrb[21].mxu0 }
 0x2cd   : > { %v1380_v45 = vpop.f32.mrb[22].mxu0 }
 0x2ce   : > { %v1386_v47 = vadd.f32 %v1384_v42, %v1378_v43  ;;  %v1381_v48 = vadd.f32 %v2560_v39, %v1380_v45  ;;  %v2766_v49 = vpop.f32.mrb[23].mxu0  ;;  %v1667_v39 = vld [vmem:[#allocation2 + $0x4] sm:$0xf] }
 0x2cf   : > { %v1672_v41 = vsel %vm1477_vm5, %v1667_v39, 0 }
 0x2d0   : > { %v1396_v50 = vadd.f32 %v1391_v40, %v1386_v47  ;;  %v1387_v51 = vadd.f32 %v1385_v46, %v1381_v48 }
 0x2d2   : > { %v1397_v54 = vadd.f32 %v1393_v52, %v1387_v51  ;;  %v1405_v55 = vadd.f32 %v2564_v53, %v1396_v50 }
 0x2d4   : > { %v1406_v56 = vadd.f32 %v2564_v53, %v1397_v54 }
 0x2d6   : > { %v3418_v58 = vpack.c.bf16 %v1406_v56, %v1405_v55 }
 0x2d8   : > { %2772 = vmatmul.mubr.msk.bf16.vlgmr.msra.gmra.mrb[20].mxu1 %vm729_vm3, %v3418_v58 }
 0x2d9   : > { %2782 = vmatpush3.bf16.msra.mxu1 %v1554_v59  ;;  %2783 = vmatprep.mubr.msk.bf16.mxu1 %vm3072_vm1, %v3071_v1 }
 0x2da   : > { %2795 = vmatprep.subr.bf16.mxu1 %v3071_v1 }
 0x3ab   : > { %v1468_v61 = vpop.f32.mrb[20].mxu1 }
 0x3ac   : > { %v2773_v62 = vpop.f32.mrb[21].mxu1  ;;  %v1469_v0 = vadd.f32 %v2565_v60, %v1468_v61 }
 0x3ad   : > { %v1471_v63 = vpop.f32.mrb[22].mxu1 }
 0x3ae   : > { %v1472_v2 = vadd.f32 %v2565_v60, %v1471_v63  ;;  %v2774_v3 = vpop.f32.mrb[23].mxu1 }
 0x3b0   : > { %v1475_v5 = vpack.c.bf16 %v1472_v2, %v1469_v0 }
 0x3b2   : > { %2778 = vmatmul.mubr.msk.bf16.vlgmr.msra.gmra.mrb[24].mxu0 %vm1477_vm5, %v1475_v5 }
 0x3b3   : > { %2788 = vmatpush3.bf16.msra.mxu0 %v2953_v4  ;;  %2791 = vmatprep.mubr.msk.bf16.mxu0 %vm3072_vm1, %v3071_v1 }
 0x3b4   : > { %2789 = vmatprep.subr.bf16.mxu0 %v3071_v1 }
 0x3b7   : > { %2790 = vmatpush3.bf16.msra.mxu0 %v2954_v6 }
 0x3b8   : > { %2801 = vmatprep.subr.bf16.mxu0 %v3071_v1 }
 0x3ba   : > { %2792 = vmatmul.mubr.msk.bf16.vlgmr.msra.gmra.mrb[28].mxu0 %vm729_vm3, %v3418_v58 }
 0x3bb   : > { %2802 = vmatpush3.bf16.msra.mxu0 %v1744_v8  ;;  %2803 = vmatprep.mubr.msk.bf16.mxu0 %vm3072_vm1, %v3071_v1 }
 0x3bc   : > { %2813 = vmatprep.subr.bf16.mxu0 %v3071_v1 }
 0x485   : > { %v1518_v9 = vpop.f32.mrb[24].mxu0 }
 0x486   : > { %v2779_v10 = vpop.f32.mrb[25].mxu0  ;;  %v1525_v11 = vsel %vm1477_vm5, %v1518_v9, -inf }
 0x487   : > { %1526 = vmax.xlane.f32.xlu1 %v1525_v11  ;;  %v1521_v12 = vpop.f32.mrb[26].mxu0  ;;  %v1950_v10 = vld [vmem:[#allocation2 + $0x8] sm:$0xf] }
 0x488   : > { %v2780_v13 = vpop.f32.mrb[27].mxu0  ;;  %v1528_v14 = vsel %vm1477_vm5, %v1521_v12, -inf  ;;  %v1955_v11 = vsel %vm1477_vm5, %v1950_v10, 0 }
 0x48b   : > { %1529 = vmax.xlane.f32.xlu1 %v1528_v14 }
 0x48d   : > { %v1658_v16 = vpop.f32.mrb[28].mxu0 }
 0x48e   : > { %v2793_v17 = vpop.f32.mrb[29].mxu0  ;;  %v1659_v19 = vadd.f32 %v2576_v15, %v1658_v16 }
 0x48f   : > { %v1661_v18 = vpop.f32.mrb[30].mxu0 }
 0x490   : > { %v1662_v20 = vadd.f32 %v2576_v15, %v1661_v18  ;;  %v2794_v21 = vpop.f32.mrb[31].mxu0  ;;  %v2582_v18 = vld [vmem:[%s3626_s16 + $0x2] sm:$0x3] }
 0x491   : > { %v2022_v21 = vld [vmem:[#allocation3 + $0x8] sm:$0xf] }
 0x492   : > { %v1665_v22 = vpack.c.bf16 %v1662_v20, %v1659_v19  ;;  %v2955_v19 = vld [vmem:[%s3620_s10 + $0x20] sm:$0xff]   ;;  %v2956_v20 = vld [vmem:[%s3620_s10 + $0x28] sm:$0xff]  }
 0x514   : > { %v1527_v23 = vpop.xlane.xlu1 %1526 }
 0x515   : > { %v1531_v24 = vsub.f32 %v1518_v9, %v1527_v23  ;;  %v1597_v9 = vld [vmem:[%s3626_s16] sm:$0x3] }
 0x517   : > { %v1533_v25 = vmul.f32 1.442695, %v1531_v24 }
 0x518   : > { %v1530_v26 = vpop.xlane.xlu1 %1529 }
 0x519   : > { %2959 = vpow2.f32 %v1533_v25  ;;  %v1532_v27 = vsub.f32 %v1521_v12, %v1530_v26 }
 0x51b   : > { %v1535_v28 = vmul.f32 1.442695, %v1532_v27 }
 0x51d   : > { %2961 = vpow2.f32 %v1535_v28 }
 0x523   : > { %v2960_v29 = vpop.eup %2959 }
 0x524   : > { %v1537_v30 = vsel %vm1477_vm5, %v2960_v29, 0.0 }
 0x525   : > { %1538 = vadd.xlane.f32.xlu0 %v1537_v30 }
 0x527   : > { %v2962_v31 = vpop.eup %2961 }
 0x528   : > { %v1540_v32 = vsel %vm1477_vm5, %v2962_v31, 0.0 }
 0x529   : > { %1541 = vadd.xlane.f32.xlu1 %v1540_v32  ;;  %v2590_v32 = vld [vmem:[%s3621_s11 + $0x2] ss:$0 sm:$0xff] }
 0x5b2   : > { %v1539_v33 = vpop.xlane.xlu0 %1538 }
 0x5b3   : > { %2963 = vrcp.f32 %v1539_v33 }
 0x5b6   : > { %v1542_v34 = vpop.xlane.xlu1 %1541 }
 0x5b7   : > { %2965 = vrcp.f32 %v1542_v34 }
 0x5bd   : > { %v2964_v35 = vpop.eup %2963 }
 0x5be   : > { %v1545_v37 = vmul.f32 %v2964_v35, %v2960_v29 }
 0x5c1   : > { %v2966_v36 = vpop.eup %2965 }
 0x5c2   : > { %v1546_v38 = vmul.f32 %v2966_v36, %v2962_v31 }
 0x5c4   : > { %v1547_v40 = vpack.c.bf16 %v1546_v38, %v1545_v37 }
 0x5c6   : > { %2784 = vmatmul.mubr.msk.bf16.vlgmr.msra.gmra.mrb[24].mxu1 %vm1477_vm5, %v1547_v40 }
 0x5c7   : > { %2796 = vmatpush3.bf16.xpose.msra.mxu1 %v1672_v41  ;;  %2797 = vmatprep.mubr.msk.bf16.mxu1 %vm3072_vm1, %v3071_v1 }
 0x5c8   : > { %2807 = vmatprep.subr.bf16.mxu1 %v3071_v1 }
 0x5ce   : > { %2798 = vmatmul.mubr.msk.bf16.vlgmr.msra.gmra.mrb[28].mxu1 %vm1477_vm5, %v1665_v22  ;;  %v2027_v22 = vsel %vm1552_vm6, %v2022_v21, 0 }
 0x5cf   : > { %2809 = vmatprep.mubr.msk.bf16.mxu1 %vm3072_vm1, %v3071_v1 }
 0x699   : > { %v1590_v42 = vpop.f32.mrb[24].mxu1 }
 0x69a   : > { %v2785_v43 = vpop.f32.mrb[25].mxu1 }
 0x69b   : > { %v1593_v44 = vpop.f32.mrb[26].mxu1 }
 0x69c   : > { %v1598_v45 = vpack.c.bf16 %v1593_v44, %v1590_v42  ;;  %v2786_v46 = vpop.f32.mrb[27].mxu1 }
 0x69e   : > { %v1840_v8 = vsel %vm1477_vm5, %v1598_v45, 0 }
 0x6a1   : > { %v1708_v47 = vpop.f32.mrb[28].mxu1 }
 0x6a2   : > { %v2799_v48 = vpop.f32.mrb[29].mxu1  ;;  %v1715_v49 = vsel %vm1477_vm5, %v1708_v47, -inf }
 0x6a3   : > { %1716 = vmax.xlane.f32.xlu1 %v1715_v49  ;;  %v1711_v50 = vpop.f32.mrb[30].mxu1 }
 0x6a4   : > { %v2800_v51 = vpop.f32.mrb[31].mxu1  ;;  %v1718_v52 = vsel %vm1477_vm5, %v1711_v50, -inf }
 0x6a7   : > { %1719 = vmax.xlane.f32.xlu1 %v1718_v52 }
 0x730   : > { %v1717_v53 = vpop.xlane.xlu1 %1716 }
 0x731   : > { %v1721_v54 = vsub.f32 %v1708_v47, %v1717_v53 }
 0x733   : > { %v1723_v55 = vmul.f32 1.442695, %v1721_v54 }
 0x734   : > { %v1720_v56 = vpop.xlane.xlu1 %1719 }
 0x735   : > { %2967 = vpow2.f32 %v1723_v55  ;;  %v1722_v57 = vsub.f32 %v1711_v50, %v1720_v56 }
 0x737   : > { %v1725_v59 = vmul.f32 1.442695, %v1722_v57 }
 0x739   : > { %2969 = vpow2.f32 %v1725_v59 }
 0x73f   : > { %v2968_v60 = vpop.eup %2967 }
 0x740   : > { %v1727_v61 = vsel %vm1477_vm5, %v2968_v60, 0.0 }
 0x741   : > { %1728 = vadd.xlane.f32.xlu1 %v1727_v61 }
 0x743   : > { %v2970_v62 = vpop.eup %2969 }
 0x744   : > { %v1730_v63 = vsel %vm1477_vm5, %v2970_v62, 0.0 }
 0x745   : > { %1731 = vadd.xlane.f32.xlu1 %v1730_v63  ;;  %v2957_v63 = vld [vmem:[%s3620_s10 + $0x30] sm:$0xff]  }
 0x7ce   : > { %v1729_v0 = vpop.xlane.xlu1 %1728 }
 0x7cf   : > { %2971 = vrcp.f32 %v1729_v0 }
 0x7d2   : > { %v1732_v2 = vpop.xlane.xlu1 %1731 }
 0x7d3   : > { %2973 = vrcp.f32 %v1732_v2  ;;  %v2958_v2 = vld [vmem:[%s3620_s10 + $0x38] sm:$0xff]  }
 0x7d9   : > { %v2972_v3 = vpop.eup %2971 }
 0x7da   : > { %v1735_v5 = vmul.f32 %v2972_v3, %v2968_v60  ;;  %v2260_v3 = vld [vmem:[#allocation3 + $0xc] sm:$0xf] }
 0x7dd   : > { %v2974_v4 = vpop.eup %2973 }
 0x7de   : > { %v1736_v6 = vmul.f32 %v2974_v4, %v2970_v62  ;;  %v2265_v4 = vsel %vm1552_vm6, %v2260_v3, 0 }
 0x7e0   : > { %v1737_v7 = vpack.c.bf16 %v1736_v6, %v1735_v5 }
 0x7e2   : > { %2804 = vmatmul.mubr.msk.bf16.vlgmr.msra.gmra.mrb[32].mxu0 %vm1477_vm5, %v1737_v7 }
 0x7e3   : > { %2814 = vmatpush3.bf16.xpose.msra.mxu0 %v1840_v8  ;;  %2815 = vmatprep.mubr.msk.bf16.mxu0 %vm3072_vm1, %v3071_v1 }
 0x7e4   : > { %2827 = vmatprep.subr.bf16.mxu0 %v3071_v1 }
 0x7ea   : > { %2816 = vmatmul.mubr.msk.bf16.vlgmr.msra.gmra.mrb[36].mxu0 %vm1477_vm5, %v1597_v9 }
 0x7eb   : > { %2828 = vmatpush3.bf16.xpose.msra.mxu0 %v1955_v11  ;;  %2829 = vmatprep.mubr.msk.bf16.mxu0 %vm3072_vm1, %v3071_v1 }
 0x7ec   : > { %2839 = vmatprep.subr.bf16.mxu0 %v3071_v1 }
 0x8b5   : > { %v1780_v12 = vpop.f32.mrb[32].mxu0 }
 0x8b6   : > { %v2805_v13 = vpop.f32.mrb[33].mxu0 }
 0x8b7   : > { %v1783_v14 = vpop.f32.mrb[34].mxu0 }
 0x8b8   : > { %v1789_v15 = vpack.c.bf16 %v1783_v14, %v1780_v12  ;;  %v2806_v16 = vpop.f32.mrb[35].mxu0  ;;  %v2596_v14 = vld [vmem:[%s3626_s16 + $0x4] sm:$0x3] }
 0x8ba   : > { %v1794_v17 = vsel %vm1477_vm5, %v1789_v15, 0  ;;  %v2188_v15 = vld [vmem:[#allocation2 + $0xc] sm:$0xf] }
 0x8bb   : > { %2808 = vmatpush3.bf16.xpose.msra.mxu1 %v1794_v17 }
 0x8bc   : > { %2819 = vmatprep.subr.bf16.mxu1 %v3071_v1 }
 0x8bd   : > { %v1876_v23 = vpop.f32.mrb[36].mxu0 }
 0x8be   : > { %v2817_v24 = vpop.f32.mrb[37].mxu0 }
 0x8bf   : > { %v1879_v25 = vpop.f32.mrb[38].mxu0 }
 0x8c0   : > { %v2818_v26 = vpop.f32.mrb[39].mxu0 }
 0x8c2   : > { %2810 = vmatmul.mubr.msk.bf16.vlgmr.msra.gmra.mrb[32].mxu1 %vm1477_vm5, %v2582_v18 }
 0x8c3   : > { %2820 = vmatpush3.bf16.msra.mxu1 %v2955_v19  ;;  %2823 = vmatprep.mubr.msk.bf16.mxu1 %vm3072_vm1, %v3071_v1 }
 0x8c4   : > { %2821 = vmatprep.subr.bf16.mxu1 %v3071_v1 }
 0x8c7   : > { %2822 = vmatpush3.bf16.msra.mxu1 %v2956_v20  ;;  %v2193_v20 = vsel %vm1477_vm5, %v2188_v15, 0 }
 0x8c8   : > { %2833 = vmatprep.subr.bf16.mxu1 %v3071_v1 }
 0x8ca   : > { %2824 = vmatmul.mubr.msk.bf16.vlgmr.msra.gmra.mrb[36].mxu1 %vm729_vm3, %v3418_v58 }
 0x8cb   : > { %2834 = vmatpush3.bf16.msra.mxu1 %v2027_v22  ;;  %2835 = vmatprep.mubr.msk.bf16.mxu1 %vm3072_vm1, %v3071_v1 }
 0x8cc   : > { %2845 = vmatprep.subr.bf16.mxu1 %v3071_v1 }
 0x995   : > { %v1830_v27 = vpop.f32.mrb[32].mxu1 }
 0x996   : > { %v3500_v28 = vadd.f32 %v1876_v23, %v1830_v27  ;;  %v2811_v29 = vpop.f32.mrb[33].mxu1 }
 0x997   : > { %v1833_v30 = vpop.f32.mrb[34].mxu1 }
 0x998   : > { %v2812_v31 = vpop.f32.mrb[35].mxu1 }
 0x99d   : > { %v1941_v33 = vpop.f32.mrb[36].mxu1 }
 0x99e   : > { %v2825_v34 = vpop.f32.mrb[37].mxu1  ;;  %v1942_v36 = vadd.f32 %v2590_v32, %v1941_v33 }
 0x99f   : > { %v1944_v35 = vpop.f32.mrb[38].mxu1 }
 0x9a0   : > { %v1945_v37 = vadd.f32 %v2590_v32, %v1944_v35  ;;  %v2826_v38 = vpop.f32.mrb[39].mxu1 }
 0x9a2   : > { %v1948_v39 = vpack.c.bf16 %v1945_v37, %v1942_v36 }
 0x9a4   : > { %2830 = vmatmul.mubr.msk.bf16.vlgmr.msra.gmra.mrb[40].mxu0 %vm1477_vm5, %v1948_v39 }
 0x9a5   : > { %2841 = vmatprep.mubr.msk.bf16.mxu0 %vm3072_vm1, %v3071_v1 }
 0xa77   : > { %v1991_v40 = vpop.f32.mrb[40].mxu0 }
 0xa78   : > { %v2831_v41 = vpop.f32.mrb[41].mxu0  ;;  %v1998_v42 = vsel %vm1477_vm5, %v1991_v40, -inf }
 0xa79   : > { %1999 = vmax.xlane.f32.xlu1 %v1998_v42  ;;  %v1994_v43 = vpop.f32.mrb[42].mxu0 }
 0xa7a   : > { %v2832_v44 = vpop.f32.mrb[43].mxu0  ;;  %v2001_v45 = vsel %vm1477_vm5, %v1994_v43, -inf }
 0xa7d   : > { %2002 = vmax.xlane.f32.xlu1 %v2001_v45 }
 0xb06   : > { %v2000_v46 = vpop.xlane.xlu1 %1999 }
 0xb07   : > { %v2004_v47 = vsub.f32 %v1991_v40, %v2000_v46 }
 0xb09   : > { %v2006_v48 = vmul.f32 1.442695, %v2004_v47 }
 0xb0a   : > { %v2003_v49 = vpop.xlane.xlu1 %2002 }
 0xb0b   : > { %2975 = vpow2.f32 %v2006_v48  ;;  %v2005_v50 = vsub.f32 %v1994_v43, %v2003_v49  ;;  %v2358_v48 = vld [vmem:[%s3627_s17] sm:$0xf]  ;;  %v3074_v49 = vmov 0  }
 0xb0c   : > { %2930 = vset.pattern.permute.xlu1 %v3074_v49  ;;  %2931 = vset.pattern.permute.xlu0 %v3074_v49 }
 0xb0d   : > { %v2008_v51 = vmul.f32 1.442695, %v2005_v50 }
 0xb0f   : > { %2977 = vpow2.f32 %v2008_v51 }
 0xb15   : > { %v2976_v52 = vpop.eup %2975 }
 0xb16   : > { %v2010_v53 = vsel %vm1477_vm5, %v2976_v52, 0.0 }
 0xb17   : > { %2011 = vadd.xlane.f32.xlu1 %v2010_v53 }
 0xb19   : > { %v2978_v54 = vpop.eup %2977 }
 0xb1a   : > { %v2013_v55 = vsel %vm1477_vm5, %v2978_v54, 0.0 }
 0xb1b   : > { %2014 = vadd.xlane.f32.xlu0 %v2013_v55 }
 0xba4   : > { %v2012_v56 = vpop.xlane.xlu1 %2011 }
 0xba5   : > { %2979 = vrcp.f32 %v2012_v56  ;;  %v2609_v56 = vld [vmem:[%s3626_s16 + $0x6] sm:$0x3] }
 0xba8   : > { %v2015_v57 = vpop.xlane.xlu0 %2014 }
 0xba9   : > { %2981 = vrcp.f32 %v2015_v57 }
 0xbaf   : > { %v2980_v59 = vpop.eup %2979 }
 0xbb0   : > { %v2018_v61 = vmul.f32 %v2980_v59, %v2976_v52 }
 0xbb3   : > { %v2982_v60 = vpop.eup %2981 }
 0xbb4   : > { %v2019_v62 = vmul.f32 %v2982_v60, %v2978_v54 }
 0xbb6   : > { %v2020_v0 = vpack.c.bf16 %v2019_v62, %v2018_v61 }
 0xbb8   : > { %2836 = vmatmul.mubr.msk.bf16.vlgmr.msra.gmra.mrb[40].mxu1 %vm1477_vm5, %v2020_v0 }
 0xbb9   : > { %2846 = vmatpush3.bf16.msra.mxu1 %v2957_v63  ;;  %2849 = vmatprep.mubr.msk.bf16.mxu1 %vm3072_vm1, %v3071_v1 }
 0xbba   : > { %2847 = vmatprep.subr.bf16.mxu1 %v3071_v1 }
 0xbbd   : > { %2848 = vmatpush3.bf16.msra.mxu1 %v2958_v2 }
 0xbbe   : > { %2859 = vmatprep.subr.bf16.mxu1 %v3071_v1 }
 0xbc0   : > { %2850 = vmatmul.mubr.msk.bf16.vlgmr.msra.gmra.mrb[44].mxu1 %vm729_vm3, %v3418_v58  ;;  %v2603_v58 = vld [vmem:[%s3621_s11 + $0x3] ss:$0 sm:$0xff] }
 0xbc1   : > { %2860 = vmatpush3.bf16.msra.mxu1 %v2265_v4  ;;  %2861 = vmatprep.mubr.msk.bf16.mxu1 %vm3072_vm1, %v3071_v1 }
 0xc8b   : > { %v2063_v5 = vpop.f32.mrb[40].mxu1 }
 0xc8c   : > { %v2837_v6 = vpop.f32.mrb[41].mxu1 }
 0xc8d   : > { %v2066_v7 = vpop.f32.mrb[42].mxu1 }
 0xc8e   : > { %v2072_v8 = vpack.c.bf16 %v2066_v7, %v2063_v5  ;;  %v2838_v9 = vpop.f32.mrb[43].mxu1 }
 0xc90   : > { %v2077_v10 = vsel %vm1477_vm5, %v2072_v8, 0 }
 0xc91   : > { %2840 = vmatpush3.bf16.xpose.msra.mxu0 %v2077_v10 }
 0xc92   : > { %2853 = vmatprep.subr.bf16.mxu0 %v3071_v1 }
 0xc93   : > { %v2179_v11 = vpop.f32.mrb[44].mxu1 }
 0xc94   : > { %v2851_v12 = vpop.f32.mrb[45].mxu1  ;;  %v2180_v16 = vadd.f32 %v2603_v58, %v2179_v11 }
 0xc95   : > { %v2182_v13 = vpop.f32.mrb[46].mxu1 }
 0xc96   : > { %v2183_v17 = vadd.f32 %v2603_v58, %v2182_v13  ;;  %v2852_v18 = vpop.f32.mrb[47].mxu1 }
 0xc98   : > { %v2186_v19 = vpack.c.bf16 %v2183_v17, %v2180_v16  ;;  %2842 = vmatmul.mubr.msk.bf16.vlgmr.msra.gmra.mrb[44].mxu0 %vm1477_vm5, %v2596_v14 }
 0xc99   : > { %2854 = vmatpush3.bf16.xpose.msra.mxu0 %v2193_v20  ;;  %2855 = vmatprep.mubr.msk.bf16.mxu0 %vm3072_vm1, %v3071_v1 }
 0xc9a   : > { %2865 = vmatprep.subr.bf16.mxu0 %v3071_v1 }
 0xca0   : > { %2856 = vmatmul.mubr.msk.bf16.vlgmr.msra.gmra.mrb[48].mxu0 %vm1477_vm5, %v2186_v19 }
 0xca1   : > { %2867 = vmatprep.mubr.msk.bf16.mxu0 %vm3072_vm1, %v3071_v1 }
 0xd6b   : > { %v2113_v21 = vpop.f32.mrb[44].mxu0 }
 0xd6c   : > { %v2119_v22 = vadd.f32 %v2113_v21, %v3500_v28  ;;  %v2843_v23 = vpop.f32.mrb[45].mxu0 }
 0xd6d   : > { %v2116_v24 = vpop.f32.mrb[46].mxu0 }
 0xd6e   : > { %v2844_v25 = vpop.f32.mrb[47].mxu0 }
 0xd73   : > { %v2229_v26 = vpop.f32.mrb[48].mxu0 }
 0xd74   : > { %v2857_v27 = vpop.f32.mrb[49].mxu0  ;;  %v2236_v29 = vsel %vm1477_vm5, %v2229_v26, -inf }
 0xd75   : > { %2237 = vmax.xlane.f32.xlu1 %v2236_v29  ;;  %v2232_v30 = vpop.f32.mrb[50].mxu0 }
 0xd76   : > { %v2858_v31 = vpop.f32.mrb[51].mxu0  ;;  %v2239_v32 = vsel %vm1477_vm5, %v2232_v30, -inf }
 0xd77   : > { %2240 = vmax.xlane.f32.xlu0 %v2239_v32 }
 0xe02   : > { %v2238_v33 = vpop.xlane.xlu1 %2237 }
 0xe03   : > { %v2242_v34 = vsub.f32 %v2229_v26, %v2238_v33 }
 0xe04   : > { %v2241_v35 = vpop.xlane.xlu0 %2240 }
 0xe05   : > { %v2244_v1 = vmul.f32 1.442695, %v2242_v34  ;;  %v2243_v36 = vsub.f32 %v2232_v30, %v2241_v35 }
 0xe07   : > { %2983 = vpow2.f32 %v2244_v1  ;;  %v2246_v28 = vmul.f32 1.442695, %v2243_v36 }
 0xe09   : > { %2985 = vpow2.f32 %v2246_v28 }
 0xe11   : > { %v2984_v37 = vpop.eup %2983 }
 0xe12   : > { %v2248_v38 = vsel %vm1477_vm5, %v2984_v37, 0.0 }
 0xe13   : > { %v2986_v39 = vpop.eup %2985  ;;  %2249 = vadd.xlane.f32.xlu1 %v2248_v38 }
 0xe14   : > { %v2251_v40 = vsel %vm1477_vm5, %v2986_v39, 0.0 }
 0xe15   : > { %2252 = vadd.xlane.f32.xlu0 %v2251_v40 }
 0xe24   : > { %2361 = vperm.xlu1 %2930, %v2358_v48  }
 0xea0   : > { %v2250_v41 = vpop.xlane.xlu1 %2249 }
 0xea1   : > { %2987 = vrcp.f32 %v2250_v41 }
 0xea2   : > { %v2253_v42 = vpop.xlane.xlu0 %2252 }
 0xea3   : > { %2989 = vrcp.f32 %v2253_v42 }
 0xea4   : > { %v2362_v59 = vpop.permute.xlu1 %2361 }
 0xeab   : > { %v2988_v43 = vpop.eup %2987 }
 0xeac   : > { %v2256_v45 = vmul.f32 %v2988_v43, %v2984_v37 }
 0xead   : > { %v2990_v44 = vpop.eup %2989 }
 0xeae   : > { %v2257_v46 = vmul.f32 %v2990_v44, %v2986_v39 }
 0xeb0   : > { %v2258_v47 = vpack.c.bf16 %v2257_v46, %v2256_v45 }
 0xeb2   : > { %2862 = vmatmul.mubr.msk.bf16.vlgmr.msra.gmra.mrb[48].mxu1 %vm1477_vm5, %v2258_v47 }
 0xf85   : > { %v2301_v50 = vpop.f32.mrb[48].mxu1 }
 0xf86   : > { %v2863_v51 = vpop.f32.mrb[49].mxu1 }
 0xf87   : > { %v2304_v52 = vpop.f32.mrb[50].mxu1 }
 0xf88   : > { %v2310_v53 = vpack.c.bf16 %v2304_v52, %v2301_v50  ;;  %v2864_v54 = vpop.f32.mrb[51].mxu1 }
 0xf8a   : > { %v2315_v55 = vsel %vm1477_vm5, %v2310_v53, 0 }
 0xf8b   : > { %2866 = vmatpush3.bf16.xpose.msra.mxu0 %v2315_v55 }
 0xf92   : > { %2868 = vmatmul.mubr.msk.bf16.vlgmr.msra.gmra.mrb[52].mxu0 %vm1477_vm5, %v2609_v56 }
0x1065   : > { %v2351_v57 = vpop.f32.mrb[52].mxu0 }
0x1066   : > { %v2357_v60 = vadd.f32 %v2351_v57, %v2119_v22  ;;  %v2869_v61 = vpop.f32.mrb[53].mxu0 }
0x1067   : > { %v2354_v62 = vpop.f32.mrb[54].mxu0 }
0x1068   : > { %v2364_v63 = vadd.f32 %v2362_v59, %v2357_v60  ;;  %v2870_v0 = vpop.f32.mrb[55].mxu0 }
0x106a   : > { %2366 = vst.msk [vmem:[%s622_s8] sm:$0xf] %vm2365_vm7, %v2364_v63 }
0x106b   : > { %3004 = shalt.err (!%p3001_p5)
}
0x106c   : > { %s3005_s22 = scalar_lea.hbm %s3563_s21, 64  ;;  %s3009_s8 = scalar_lea.hbm %s3628_s18, 128 }
0x106d   : > { %p3006_p6 = scmp.ne.s32.totalorder %s3563_s21, %s3005_s22  ;;  %p3010_p10 = scmp.lt.u32.totalorder %s3563_s21, %s3628_s18 }
0x106e   : > { %p3011_p11 = scmp.lt.u32.totalorder %s3009_s8, %s3005_s22  ;;  %p3013_p13 = scmp.lt.u32.totalorder %s3005_s22, %s3563_s21 }
0x106f   : > { %p3007_p7 = pnand %p3006_p6, %p3211_p4 }
0x1070   : > { %p3012_p12 = por %p3011_p11, %p3010_p10 }
0x1071   : > { %p3008_p9 = pneg %p3007_p7 }
0x1072   : > { %p3014_p0 = por %p3013_p13, %p3012_p12 }
0x1074   : > { %p3015_p1 = pnand %p3014_p0, %p3008_p9 }
0x1076   : > { %3018 = shalt.err (!%p3015_p1)
}
0x1077   : > { %2871 = dma.vmem_to_hbm [thread:$0]  (%p3211_p4), %s3565_s0, 64, %s3563_s21, %s2368_s30  }
0x1078 PF: > { %s3654_s24 = sld [smem:[#allocation10_spill]]  ;;  %s3655_s25 = sld [smem:[#allocation7_spill]] }
0x107e   : > { %p2877_p2 = scmp.ge.s32.totalorder %s3654_s24, 2  ;;  %s2394_s20 = sand.u32 1, %s3655_s25  }
0x107f   : > { %s2395_s19 = scalar_lea.sflag [#allocation5], %s2394_s20 }
0x1080   : > { %p2874_p3 = pnand %p2877_p2, %p3218_p8 }
0x1082   : > { %3044 = dma.done.wait (!%p2874_p3), %s2395_s19, 64  }
0x1083   : > { %3046 = vsyncadd (!%p2874_p3), %s2395_s19, 4294967232  ;;  %s31_s19 = sadd.s32 1, %s3654_s24   ;;  %s3657_s22 = sld [smem:[#allocation8_spill]] }
0x1084   : > { %p28_p5 = scmp.ge.s32.totalorder %s31_s19, 4   ;;  %s3658_s29 = sld [smem:[#allocation13_spill]] }
0x1085   : > { %s3659_s30 = sld [smem:[#allocation9_spill]]  ;;  %s3660_s0 = sld [smem:[#allocation11_spill]] }
0x1086   : > { %s3661_s27 = smov %s3053_s28  ;;  %30 = sbr.rel (!%p28_p5) target bundleno = 9 (0x9), region = 170 }
0x1089   : > { %s3662_s28 = smov %s3657_s22 }
0x108d   :  { %2400 = vsyncpa [#allocation5], 1 }
0x108e   :  { %2402 = vsyncpa [#allocation5 + $0x1], 1 }

</bundles_post_ra>
